<compile_context>
chip_gen: v7x
topology: tpu7x:2x2x1
jax: 0.10.0
libtpu: 0.0.40
codegen_flags: <defaults>
</compile_context>

<pallas_src>
import jax
import jax.numpy as jnp
from jax import lax
from jax.experimental import pallas as pl
from jax.experimental.pallas import tpu as pltpu

EPS = 1e-5      # BatchNorm1d default eps
LANE = 128      # TPU lane width


def _round_up(v, m):
    return (v + m - 1) // m * m


def _pad_axis(a, axis, new_size):
    pad = new_size - a.shape[axis]
    if pad == 0:
        return a
    widths = [(0, 0)] * a.ndim
    widths[axis] = (0, pad)
    return jnp.pad(a, widths)


def _pick_tile_t(T, cin_p, h_p, cout_p, target=1024, budget=20 * 1024 * 1024):
    """Token tile: either one >=8-aligned tile covering all tokens, or a large
    multiple of 128 (lane-dense transposed store) that fits the VMEM budget."""
    def per_tile_bytes(tt):
        stream = 2 * tt * cin_p * 2 + 2 * tt * cout_p * 4   # dbl-buf x(bf16)+out(f32)
        live = tt * (cin_p + 2 * h_p + cout_p) * 4          # in-kernel f32 intermediates
        return stream + live

    tt = target
    while tt > 128 and per_tile_bytes(tt) > budget:
        tt //= 2
    if T <= tt:
        return _round_up(T, 8)          # single tile covers all (padded) tokens
    return tt                           # multiple of 128 by construction


def _vmem_limit(tile_t, cin_p, h_p, cout_p, single_buffer_weights):
    wmult = 1 if single_buffer_weights else 2
    weights = wmult * (2 * (cin_p * h_p + h_p * cout_p + cin_p * cout_p) + 4 * cout_p)
    rows = 2 * 4 * 2 * (cin_p + h_p)                        # dbl-buffered (1,C) f32 rows
    stream = 2 * tile_t * cin_p * 2 + 2 * tile_t * cout_p * 4
    live = tile_t * (cin_p + 2 * h_p + cout_p) * 4
    need = weights + rows + stream + live + (4 << 20)       # + slack
    try:
        phys = pltpu.get_tpu_info().vmem_capacity_bytes
        cap = min(phys * 3 // 4, 96 << 20)                  # ~96 MiB v5e/v6e, ~48 MiB v7x
    except Exception:
        cap = 48 << 20
    return int(max(min(need, cap), 16 << 20))


def _make_kernel(n_tokens, n_valid_t, tile_t, needs_mask):
    inv_n = 1.0 / float(n_tokens)

    def kernel(x_ref, sc0_ref, sh0_ref, g1_ref, b1_ref,
               w0_ref, w1_ref, fb1_ref, ws_ref,
               o_ref, s1_ref, sq1_ref):
        p = pl.program_id(0)
        b = pl.program_id(1)
        t = pl.program_id(2)

        x_bf = x_ref[...]                          # (tile_t, Cin_p) bf16
        x = x_bf.astype(jnp.float32)

        def h2_centered():
            # Folded BN0 + conditional affine (scale/shift precomputed per batch
            # in the wrapper): one mul + one add per element.  fc0's bias is
            # omitted on purpose — a per-channel constant is removed exactly by
            # BN1, so it cannot affect the output, and its absence acts as a
            # shifted sum for the single-pass variance below.
            h = jnp.maximum(sc0_ref[...] * x + sh0_ref[...], 0.0)
            return jnp.dot(h.astype(jnp.bfloat16), w0_ref[...],
                           preferred_element_type=jnp.float32)

        # ---------- phase 0 : BN1 statistics (f32 sum / sum-of-squares) ----------
        @pl.when(p == 0)
        def _():
            @pl.when(jnp.logical_and(b == 0, t == 0))
            def _():
                s1_ref[...] = jnp.zeros_like(s1_ref)
                sq1_ref[...] = jnp.zeros_like(sq1_ref)
            h2 = h2_centered()                     # (tile_t, H_p) f32
            if needs_mask:                         # zero padded token rows
                rows = t * tile_t + lax.broadcasted_iota(jnp.int32, (tile_t, 1), 0)
                h2 = jnp.where(rows < n_valid_t, h2, 0.0)
            s1_ref[...] += jnp.sum(h2, axis=0, keepdims=True)
            sq1_ref[...] += jnp.sum(h2 * h2, axis=0, keepdims=True)

        # ---------- phase 1 : BN1-normalize + fc1 + skip, transposed store -------
        @pl.when(p == 1)
        def _():
            h2 = h2_centered()
            m1 = s1_ref[...] * inv_n               # (1, H_p) mean of bias-free h2
            var1 = jnp.maximum(sq1_ref[...] * inv_n - m1 * m1, 0.0)
            scale1 = g1_ref[...] * lax.rsqrt(var1 + EPS)
            shift1 = b1_ref[...] - scale1 * m1
            g = jnp.maximum(scale1 * h2 + shift1, 0.0)
            out = jnp.dot(g.astype(jnp.bfloat16), w1_ref[...],
                          preferred_element_type=jnp.float32) + fb1_ref[...]
            # TODO(synk): on v5e with Cin_p >= ~512, write h2 to HBM as bf16 in
            # phase 0 and reload here instead of recomputing (MXU-bound regime).
            out = out + jnp.dot(x_bf, ws_ref[...],
                                preferred_element_type=jnp.float32)
            # Channels-first store: wrapper needs no post-kernel transpose.
            # TODO(synk): emit bf16 output if the consumer tolerates it.
            o_ref[...] = out.T                     # (Cout_p, tile_t)

    return kernel


def cond_res_block(x_nct, c, params):
    """x_nct: (B, C_in, T) like PyTorch Conv1d input. Returns (B, C_out, T) f32."""
    B, Cin, T = x_nct.shape
    H = params["fc0_w"].shape[1]
    Cout = params["fc1_w"].shape[1]

    Cin_p = _round_up(Cin, LANE)
    H_p = _round_up(H, LANE)
    Cout_p = _round_up(Cout, LANE)

    # NCL -> NLC once; BN0 statistics two-pass in f32 (no cancellation risk) and
    # folded with the per-batch conditional affine into a single scale/shift row.
    x = jnp.transpose(x_nct, (0, 2, 1)).astype(jnp.float32)          # (B, T, Cin)
    mean0 = jnp.mean(x, axis=(0, 1), keepdims=True)                  # (1, 1, Cin)
    var0 = jnp.mean(jnp.square(x - mean0), axis=(0, 1), keepdims=True)
    inv_std0 = lax.rsqrt(var0 + EPS)

    gamma0 = (c @ params["g0_w"] + params["g0_b"])[:, None, :]       # (B, 1, Cin)
    beta0 = (c @ params["b0_w"] + params["b0_b"])[:, None, :]
    sc0 = gamma0 * inv_std0
    sh0 = beta0 - mean0 * sc0
    scale0 = _pad_axis(sc0.astype(jnp.float32), 2, Cin_p)
    shift0 = _pad_axis(sh0.astype(jnp.float32), 2, Cin_p)

    gamma1 = _pad_axis(((c @ params["g1_w"] + params["g1_b"])[:, None, :])
                       .astype(jnp.float32), 2, H_p)
    beta1 = _pad_axis(((c @ params["b1_w"] + params["b1_b"])[:, None, :])
                      .astype(jnp.float32), 2, H_p)

    # Token tiling: pad T to a multiple of a large tile; padded rows are masked
    # out of the BN1 statistics inside the kernel.
    tile_t = _pick_tile_t(T, Cin_p, H_p, Cout_p)
    T_pad = _round_up(T, tile_t)
    nt = T_pad // tile_t
    needs_mask = T_pad != T

    # x streamed in bf16 (BN0 stats above already consumed full-precision x).
    x_bf = _pad_axis(_pad_axis(x, 1, T_pad), 2, Cin_p).astype(jnp.bfloat16)

    # Weights zero-padded; bf16 for the MXU, fc1 bias stays f32.  fc0 bias is not
    # passed: BN1 removes any per-channel constant shift exactly.
    w0 = _pad_axis(_pad_axis(params["fc0_w"], 0, Cin_p), 1, H_p).astype(jnp.bfloat16)
    w1 = _pad_axis(_pad_axis(params["fc1_w"], 0, H_p), 1, Cout_p).astype(jnp.bfloat16)
    fb1 = _pad_axis(params["fc1_b"].reshape(1, -1), 1, Cout_p).astype(jnp.float32)
    ws_raw = params.get("skip_w")
    if ws_raw is None:                      # in_dim == out_dim -> identity skip
        ws_raw = jnp.eye(Cin, dtype=jnp.float32)
    ws = _pad_axis(_pad_axis(ws_raw, 0, Cin_p), 1, Cout_p).astype(jnp.bfloat16)

    grid = (2, B, nt)
    n_tokens = B * T
    n_pad = B * T_pad

    flops = 2 * n_pad * (2 * Cin_p * H_p + H_p * Cout_p + Cin_p * Cout_p)
    bytes_accessed = (n_pad * (2 * 2 * Cin_p + 4 * Cout_p)
                      + 2 * (Cin_p * H_p + H_p * Cout_p + Cin_p * Cout_p))
    cost = pl.CostEstimate(flops=int(flops), transcendentals=int(B * nt * H_p),
                           bytes_accessed=int(bytes_accessed))

    tok_spec = pl.BlockSpec((None, tile_t, Cin_p), lambda p, b, t: (b, t, 0))

    def row_spec(cp):
        return pl.BlockSpec((None, 1, cp), lambda p, b, t: (b, 0, 0))

    def out_index_map(p, b, t):
        on = p == 1                          # keep block (0,0,0) during phase 0 so
        return (jnp.where(on, b, 0), 0,      # no uninitialized block is flushed
                jnp.where(on, t, 0))

    kernel = _make_kernel(n_tokens, T, tile_t, needs_mask)

    def run(single_buffer_weights):
        kw = dict(pipeline_mode=pl.Buffered(1)) if single_buffer_weights else {}

        def full_spec(shape):
            return pl.BlockSpec(shape, lambda p, b, t: (0, 0), **kw)

        return pl.pallas_call(
            kernel,
            out_shape=jax.ShapeDtypeStruct((B, Cout_p, T_pad), jnp.float32),
            grid_spec=pltpu.PrefetchScalarGridSpec(
                num_scalar_prefetch=0,
                grid=grid,
                in_specs=[
                    tok_spec,                     # x           (bf16, streamed)
                    row_spec(Cin_p),              # scale0      (per-batch row)
                    row_spec(Cin_p),              # shift0
                    row_spec(H_p),                # gamma1
                    row_spec(H_p),                # beta1
                    full_spec((Cin_p, H_p)),      # fc0 weight  (resident)
                    full_spec((H_p, Cout_p)),     # fc1 weight  (resident)
                    full_spec((1, Cout_p)),       # fc1 bias
                    full_spec((Cin_p, Cout_p)),   # skip weight (resident)
                ],
                out_specs=pl.BlockSpec((None, Cout_p, tile_t), out_index_map),
                scratch_shapes=[
                    pltpu.VMEM((1, H_p), jnp.float32),   # sum(h2)
                    pltpu.VMEM((1, H_p), jnp.float32),   # sum(h2^2)
                ]),
            compiler_params=pltpu.CompilerParams(
                # BN1 stats carry across every axis -> keep them sequential.
                # TODO(synk): v7x dual-TC split — shard B/token "parallel" across
                # the 2 TensorCores, keep per-core BN1 partials in private VMEM
                # and combine via CMEM/VMEM_SHARED + core_barrier before phase 1.
                dimension_semantics=("arbitrary", "arbitrary", "arbitrary"),
                vmem_limit_bytes=_vmem_limit(tile_t, Cin_p, H_p, Cout_p,
                                             single_buffer_weights)),
            cost_estimate=cost,
        )(x_bf, scale0, shift0, gamma1, beta1, w0, w1, fb1, ws)

    try:
        # Single-buffer the resident weights (constant index_map): frees VMEM
        # headroom for larger token tiles (matters most on v7x's 64 MiB VMEM).
        out = jax.block_until_ready(run(True))
    except Exception:
        out = jax.block_until_ready(run(False))   # fallback: default buffering

    # Output is already channels-first; just drop the padded lanes / rows.
    return out[:, :Cout, :T]


def _reference(x_nct, c, p):
    """Pure-JAX f32 reference (mirrors the PyTorch module exactly)."""
    xt = jnp.transpose(x_nct, (0, 2, 1))

    def bn(v):  # v: (B, T, C) — BatchNorm1d over (batch, token)
        m = jnp.mean(v, axis=(0, 1), keepdims=True)
        var = jnp.mean((v - m) ** 2, axis=(0, 1), keepdims=True)
        return (v - m) * lax.rsqrt(var + EPS)

    g0 = c @ p["g0_w"] + p["g0_b"]
    b0 = c @ p["b0_w"] + p["b0_b"]
    h = jnp.maximum(g0[:, None, :] * bn(xt) + b0[:, None, :], 0.0)
    h = h @ p["fc0_w"] + p["fc0_b"][None]
    g1 = c @ p["g1_w"] + p["g1_b"]
    b1 = c @ p["b1_w"] + p["b1_b"]
    h = jnp.maximum(g1[:, None, :] * bn(h) + b1[:, None, :], 0.0)
    o = h @ p["fc1_w"] + p["fc1_b"][None]
    s = xt @ p["skip_w"] if p.get("skip_w") is not None else xt
    return jnp.transpose(s + o, (0, 2, 1))


def _check(B, T, c_dim, in_dim, h_dim, out_dim, seed, use_skip):
    key = jax.random.PRNGKey(seed)
    ks = jax.random.split(key, 12)

    def rn(k, shape, scale=0.1):
        return scale * jax.random.normal(k, shape, dtype=jnp.float32)

    x = jax.random.normal(ks[0], (B, in_dim, T), dtype=jnp.float32)
    c = jax.random.normal(ks[1], (B, c_dim), dtype=jnp.float32)

    # NOTE: the module zero-inits gamma/beta Linear weights and fc_1.weight; we
    # use small random values so the kernel path is numerically non-trivial.
    params = dict(
        g0_w=rn(ks[2], (c_dim, in_dim)), g0_b=jnp.ones((1, in_dim), jnp.float32),
        b0_w=rn(ks[3], (c_dim, in_dim)), b0_b=jnp.zeros((1, in_dim), jnp.float32),
        fc0_w=rn(ks[4], (in_dim, h_dim)), fc0_b=rn(ks[5], (1, h_dim)),
        g1_w=rn(ks[6], (c_dim, h_dim)), g1_b=jnp.ones((1, h_dim), jnp.float32),
        b1_w=rn(ks[7], (c_dim, h_dim)), b1_b=jnp.zeros((1, h_dim), jnp.float32),
        fc1_w=rn(ks[8], (h_dim, out_dim)), fc1_b=rn(ks[9], (1, out_dim)),
    )
    if use_skip:
        params["skip_w"] = rn(ks[10], (in_dim, out_dim))

    out = jax.block_until_ready(cond_res_block(x, c, params))
    expected = _reference(x, c, params)

    assert out.shape == (B, out_dim, T), out.shape
    # bf16 MXU matmuls (f32 accumulation, f32 BN stats) vs the f32 reference.
    assert jnp.allclose(out, expected, atol=3e-2, rtol=3e-2), \
        float(jnp.max(jnp.abs(out - expected)))


if __name__ == "__main__":
    # Case 1: in_dim != out_dim -> 1x1-conv skip path.
    _check(B=2, T=16, c_dim=8, in_dim=8, h_dim=16, out_dim=12, seed=0, use_skip=True)
    # Case 2: T not a multiple of 8 (exercises token padding + BN1-stat masking)
    # and in_dim == out_dim -> identity skip path.
    _check(B=2, T=20, c_dim=8, in_dim=16, h_dim=24, out_dim=16, seed=1, use_skip=False)
    print("KERNEL_OK")
</pallas_src>

<mosaic_0001>
module attributes {stable_mosaic.version = 11 : i64} {
  func.func @kernel(%arg0: i32, %arg1: i32, %arg2: i32, %arg3: memref<1x16x128xbf16, #tpu.memory_space<vmem>>, %arg4: memref<1x1x128xf32, #tpu.memory_space<vmem>>, %arg5: memref<1x1x128xf32, #tpu.memory_space<vmem>>, %arg6: memref<1x1x128xf32, #tpu.memory_space<vmem>>, %arg7: memref<1x1x128xf32, #tpu.memory_space<vmem>>, %arg8: memref<128x128xbf16, #tpu.memory_space<vmem>>, %arg9: memref<128x128xbf16, #tpu.memory_space<vmem>>, %arg10: memref<1x128xf32, #tpu.memory_space<vmem>>, %arg11: memref<128x128xbf16, #tpu.memory_space<vmem>>, %arg12: memref<1x128x16xf32, #tpu.memory_space<vmem>>, %arg13: memref<1x128xf32, #tpu.memory_space<vmem>>, %arg14: memref<1x128xf32, #tpu.memory_space<vmem>>) attributes {dimension_semantics = [#tpu.dimension_semantics<arbitrary>, #tpu.dimension_semantics<arbitrary>, #tpu.dimension_semantics<arbitrary>], iteration_bounds = array<i64: 2, 2, 1>, scalar_prefetch = 0 : i64, scratch_operands = 2 : i64, tpu.core_type = #tpu.core_type<tc>, window_params = [{transform_indices = @transform_0, window_bounds = array<i64: 1, 16, 128>}, {transform_indices = @transform_1, window_bounds = array<i64: 1, 1, 128>}, {transform_indices = @transform_2, window_bounds = array<i64: 1, 1, 128>}, {transform_indices = @transform_3, window_bounds = array<i64: 1, 1, 128>}, {transform_indices = @transform_4, window_bounds = array<i64: 1, 1, 128>}, {pipeline_mode = #tpu.pipeline_mode<synchronous>, transform_indices = @transform_5, window_bounds = array<i64: 128, 128>}, {pipeline_mode = #tpu.pipeline_mode<synchronous>, transform_indices = @transform_6, window_bounds = array<i64: 128, 128>}, {pipeline_mode = #tpu.pipeline_mode<synchronous>, transform_indices = @transform_7, window_bounds = array<i64: 1, 128>}, {pipeline_mode = #tpu.pipeline_mode<synchronous>, transform_indices = @transform_8, window_bounds = array<i64: 128, 128>}, {transform_indices = @transform_9, window_bounds = array<i64: 1, 128, 16>}]} {
    %c0 = arith.constant 0 : index
    %c0_0 = arith.constant 0 : index
    %c0_1 = arith.constant 0 : index
    %0 = vector.load %arg3[%c0, %c0_0, %c0_1] : memref<1x16x128xbf16, #tpu.memory_space<vmem>>, vector<1x16x128xbf16>
    %1 = vector.shape_cast %0 : vector<1x16x128xbf16> to vector<16x128xbf16>
    %2 = arith.extf %1 : vector<16x128xbf16> to vector<16x128xf32>
    %c0_i32 = arith.constant 0 : i32
    %3 = arith.cmpi eq, %arg0, %c0_i32 : i32
    %4 = arith.extui %3 : i1 to i32
    %c0_i32_2 = arith.constant 0 : i32
    %5 = arith.cmpi ne, %4, %c0_i32_2 : i32
    scf.if %5 {
      %c0_i32_4 = arith.constant 0 : i32
      %9 = arith.cmpi eq, %arg1, %c0_i32_4 : i32
      %c0_i32_5 = arith.constant 0 : i32
      %10 = arith.cmpi eq, %arg2, %c0_i32_5 : i32
      %11 = arith.andi %9, %10 : i1
      %12 = arith.extui %11 : i1 to i32
      %c0_i32_6 = arith.constant 0 : i32
      %13 = arith.cmpi ne, %12, %c0_i32_6 : i32
      scf.if %13 {
        %cst_26 = arith.constant 0.000000e+00 : f32
        %38 = vector.broadcast %cst_26 : f32 to vector<1x128xf32>
        %c0_27 = arith.constant 0 : index
        %c0_28 = arith.constant 0 : index
        %39 = vector.load %arg13[%c0_27, %c0_28] : memref<1x128xf32, #tpu.memory_space<vmem>>, vector<1x128xf32>
        tpu.vector_store %arg13[%c0_27, %c0_28], %38 {strides = array<i32>} : memref<1x128xf32, #tpu.memory_space<vmem>>, vector<1x128xf32>,
        %cst_29 = arith.constant 0.000000e+00 : f32
        %40 = vector.broadcast %cst_29 : f32 to vector<1x128xf32>
        %c0_30 = arith.constant 0 : index
        %c0_31 = arith.constant 0 : index
        %41 = vector.load %arg14[%c0_30, %c0_31] : memref<1x128xf32, #tpu.memory_space<vmem>>, vector<1x128xf32>
        tpu.vector_store %arg14[%c0_30, %c0_31], %40 {strides = array<i32>} : memref<1x128xf32, #tpu.memory_space<vmem>>, vector<1x128xf32>,
      } else {
      }
      %c0_7 = arith.constant 0 : index
      %c0_8 = arith.constant 0 : index
      %c0_9 = arith.constant 0 : index
      %14 = vector.load %arg4[%c0_7, %c0_8, %c0_9] : memref<1x1x128xf32, #tpu.memory_space<vmem>>, vector<1x1x128xf32>
      %15 = vector.shape_cast %14 : vector<1x1x128xf32> to vector<1x128xf32>
      %16 = vector.broadcast %15 : vector<1x128xf32> to vector<16x128xf32>
      %17 = arith.mulf %16, %2 : vector<16x128xf32>
      %c0_10 = arith.constant 0 : index
      %c0_11 = arith.constant 0 : index
      %c0_12 = arith.constant 0 : index
      %18 = vector.load %arg5[%c0_10, %c0_11, %c0_12] : memref<1x1x128xf32, #tpu.memory_space<vmem>>, vector<1x1x128xf32>
      %19 = vector.shape_cast %18 : vector<1x1x128xf32> to vector<1x128xf32>
      %20 = vector.broadcast %19 : vector<1x128xf32> to vector<16x128xf32>
      %21 = arith.addf %17, %20 : vector<16x128xf32>
      %cst = arith.constant 0.000000e+00 : f32
      %22 = vector.broadcast %cst : f32 to vector<16x128xf32>
      %23 = arith.maximumf %21, %22 : vector<16x128xf32>
      %24 = arith.truncf %23 : vector<16x128xf32> to vector<16x128xbf16>
      %c0_13 = arith.constant 0 : index
      %c0_14 = arith.constant 0 : index
      %25 = vector.load %arg8[%c0_13, %c0_14] : memref<128x128xbf16, #tpu.memory_space<vmem>>, vector<128x128xbf16>
      %cst_15 = arith.constant dense<0.000000e+00> : vector<16x128xf32>
      %26 = tpu.matmul %24, %25, %cst_15 {dimension_numbers = #tpu.dot_dimension_numbers<[1], [0], [0], [1], [0, 0, 1, 1], [], []>} : vector<16x128xbf16>, vector<128x128xbf16>, vector<16x128xf32> -> vector<16x128xf32>
      %c0_16 = arith.constant 0 : index
      %c0_17 = arith.constant 0 : index
      %27 = vector.load %arg13[%c0_16, %c0_17] : memref<1x128xf32, #tpu.memory_space<vmem>>, vector<1x128xf32>
      %cst_18 = arith.constant dense<0.000000e+00> : vector<128xf32>
      %28 = vector.multi_reduction <add>, %26, %cst_18 [0] : vector<16x128xf32> to vector<128xf32>
      %29 = vector.shape_cast %28 : vector<128xf32> to vector<1x128xf32>
      %30 = arith.addf %27, %29 : vector<1x128xf32>
      %c0_19 = arith.constant 0 : index
      %c0_20 = arith.constant 0 : index
      %31 = vector.load %arg13[%c0_19, %c0_20] : memref<1x128xf32, #tpu.memory_space<vmem>>, vector<1x128xf32>
      tpu.vector_store %arg13[%c0_19, %c0_20], %30 {strides = array<i32>} : memref<1x128xf32, #tpu.memory_space<vmem>>, vector<1x128xf32>,
      %c0_21 = arith.constant 0 : index
      %c0_22 = arith.constant 0 : index
      %32 = vector.load %arg14[%c0_21, %c0_22] : memref<1x128xf32, #tpu.memory_space<vmem>>, vector<1x128xf32>
      %33 = arith.mulf %26, %26 : vector<16x128xf32>
      %cst_23 = arith.constant dense<0.000000e+00> : vector<128xf32>
      %34 = vector.multi_reduction <add>, %33, %cst_23 [0] : vector<16x128xf32> to vector<128xf32>
      %35 = vector.shape_cast %34 : vector<128xf32> to vector<1x128xf32>
      %36 = arith.addf %32, %35 : vector<1x128xf32>
      %c0_24 = arith.constant 0 : index
      %c0_25 = arith.constant 0 : index
      %37 = vector.load %arg14[%c0_24, %c0_25] : memref<1x128xf32, #tpu.memory_space<vmem>>, vector<1x128xf32>
      tpu.vector_store %arg14[%c0_24, %c0_25], %36 {strides = array<i32>} : memref<1x128xf32, #tpu.memory_space<vmem>>, vector<1x128xf32>,
    } else {
    }
    %c1_i32 = arith.constant 1 : i32
    %6 = arith.cmpi eq, %arg0, %c1_i32 : i32
    %7 = arith.extui %6 : i1 to i32
    %c0_i32_3 = arith.constant 0 : i32
    %8 = arith.cmpi ne, %7, %c0_i32_3 : i32
    scf.if %8 {
      %c0_4 = arith.constant 0 : index
      %c0_5 = arith.constant 0 : index
      %c0_6 = arith.constant 0 : index
      %9 = vector.load %arg4[%c0_4, %c0_5, %c0_6] : memref<1x1x128xf32, #tpu.memory_space<vmem>>, vector<1x1x128xf32>
      %10 = vector.shape_cast %9 : vector<1x1x128xf32> to vector<1x128xf32>
      %11 = vector.broadcast %10 : vector<1x128xf32> to vector<16x128xf32>
      %12 = arith.mulf %11, %2 : vector<16x128xf32>
      %c0_7 = arith.constant 0 : index
      %c0_8 = arith.constant 0 : index
      %c0_9 = arith.constant 0 : index
      %13 = vector.load %arg5[%c0_7, %c0_8, %c0_9] : memref<1x1x128xf32, #tpu.memory_space<vmem>>, vector<1x1x128xf32>
      %14 = vector.shape_cast %13 : vector<1x1x128xf32> to vector<1x128xf32>
      %15 = vector.broadcast %14 : vector<1x128xf32> to vector<16x128xf32>
      %16 = arith.addf %12, %15 : vector<16x128xf32>
      %cst = arith.constant 0.000000e+00 : f32
      %17 = vector.broadcast %cst : f32 to vector<16x128xf32>
      %18 = arith.maximumf %16, %17 : vector<16x128xf32>
      %19 = arith.truncf %18 : vector<16x128xf32> to vector<16x128xbf16>
      %c0_10 = arith.constant 0 : index
      %c0_11 = arith.constant 0 : index
      %20 = vector.load %arg8[%c0_10, %c0_11] : memref<128x128xbf16, #tpu.memory_space<vmem>>, vector<128x128xbf16>
      %cst_12 = arith.constant dense<0.000000e+00> : vector<16x128xf32>
      %21 = tpu.matmul %19, %20, %cst_12 {dimension_numbers = #tpu.dot_dimension_numbers<[1], [0], [0], [1], [0, 0, 1, 1], [], []>} : vector<16x128xbf16>, vector<128x128xbf16>, vector<16x128xf32> -> vector<16x128xf32>
      %c0_13 = arith.constant 0 : index
      %c0_14 = arith.constant 0 : index
      %22 = vector.load %arg13[%c0_13, %c0_14] : memref<1x128xf32, #tpu.memory_space<vmem>>, vector<1x128xf32>
      %cst_15 = arith.constant 3.125000e-02 : f32
      %23 = vector.broadcast %cst_15 : f32 to vector<1x128xf32>
      %24 = arith.mulf %22, %23 : vector<1x128xf32>
      %c0_16 = arith.constant 0 : index
      %c0_17 = arith.constant 0 : index
      %25 = vector.load %arg14[%c0_16, %c0_17] : memref<1x128xf32, #tpu.memory_space<vmem>>, vector<1x128xf32>
      %cst_18 = arith.constant 3.125000e-02 : f32
      %26 = vector.broadcast %cst_18 : f32 to vector<1x128xf32>
      %27 = arith.mulf %25, %26 : vector<1x128xf32>
      %28 = arith.mulf %24, %24 : vector<1x128xf32>
      %29 = arith.subf %27, %28 : vector<1x128xf32>
      %cst_19 = arith.constant 0.000000e+00 : f32
      %30 = vector.broadcast %cst_19 : f32 to vector<1x128xf32>
      %31 = arith.maximumf %29, %30 : vector<1x128xf32>
      %c0_20 = arith.constant 0 : index
      %c0_21 = arith.constant 0 : index
      %c0_22 = arith.constant 0 : index
      %32 = vector.load %arg6[%c0_20, %c0_21, %c0_22] : memref<1x1x128xf32, #tpu.memory_space<vmem>>, vector<1x1x128xf32>
      %33 = vector.shape_cast %32 : vector<1x1x128xf32> to vector<1x128xf32>
      %cst_23 = arith.constant 9.99999974E-6 : f32
      %34 = vector.broadcast %cst_23 : f32 to vector<1x128xf32>
      %35 = arith.addf %31, %34 : vector<1x128xf32>
      %36 = math.rsqrt %35 : vector<1x128xf32>
      %37 = arith.mulf %33, %36 : vector<1x128xf32>
      %c0_24 = arith.constant 0 : index
      %c0_25 = arith.constant 0 : index
      %c0_26 = arith.constant 0 : index
      %38 = vector.load %arg7[%c0_24, %c0_25, %c0_26] : memref<1x1x128xf32, #tpu.memory_space<vmem>>, vector<1x1x128xf32>
      %39 = vector.shape_cast %38 : vector<1x1x128xf32> to vector<1x128xf32>
      %40 = arith.mulf %37, %24 : vector<1x128xf32>
      %41 = arith.subf %39, %40 : vector<1x128xf32>
      %42 = vector.broadcast %37 : vector<1x128xf32> to vector<16x128xf32>
      %43 = arith.mulf %42, %21 : vector<16x128xf32>
      %44 = vector.broadcast %41 : vector<1x128xf32> to vector<16x128xf32>
      %45 = arith.addf %43, %44 : vector<16x128xf32>
      %cst_27 = arith.constant 0.000000e+00 : f32
      %46 = vector.broadcast %cst_27 : f32 to vector<16x128xf32>
      %47 = arith.maximumf %45, %46 : vector<16x128xf32>
      %48 = arith.truncf %47 : vector<16x128xf32> to vector<16x128xbf16>
      %c0_28 = arith.constant 0 : index
      %c0_29 = arith.constant 0 : index
      %49 = vector.load %arg9[%c0_28, %c0_29] : memref<128x128xbf16, #tpu.memory_space<vmem>>, vector<128x128xbf16>
      %cst_30 = arith.constant dense<0.000000e+00> : vector<16x128xf32>
      %50 = tpu.matmul %48, %49, %cst_30 {dimension_numbers = #tpu.dot_dimension_numbers<[1], [0], [0], [1], [0, 0, 1, 1], [], []>} : vector<16x128xbf16>, vector<128x128xbf16>, vector<16x128xf32> -> vector<16x128xf32>
      %c0_31 = arith.constant 0 : index
      %c0_32 = arith.constant 0 : index
      %51 = vector.load %arg10[%c0_31, %c0_32] : memref<1x128xf32, #tpu.memory_space<vmem>>, vector<1x128xf32>
      %52 = vector.broadcast %51 : vector<1x128xf32> to vector<16x128xf32>
      %53 = arith.addf %50, %52 : vector<16x128xf32>
      %c0_33 = arith.constant 0 : index
      %c0_34 = arith.constant 0 : index
      %54 = vector.load %arg11[%c0_33, %c0_34] : memref<128x128xbf16, #tpu.memory_space<vmem>>, vector<128x128xbf16>
      %cst_35 = arith.constant dense<0.000000e+00> : vector<16x128xf32>
      %55 = tpu.matmul %1, %54, %cst_35 {dimension_numbers = #tpu.dot_dimension_numbers<[1], [0], [0], [1], [0, 0, 1, 1], [], []>} : vector<16x128xbf16>, vector<128x128xbf16>, vector<16x128xf32> -> vector<16x128xf32>
      %56 = arith.addf %53, %55 : vector<16x128xf32>
      %57 = tpu.transpose %56, [1, 0] : vector<16x128xf32> -> vector<128x16xf32>
      %c0_36 = arith.constant 0 : index
      %c0_37 = arith.constant 0 : index
      %c0_38 = arith.constant 0 : index
      %58 = vector.load %arg12[%c0_36, %c0_37, %c0_38] : memref<1x128x16xf32, #tpu.memory_space<vmem>>, vector<1x128x16xf32>
      %59 = vector.shape_cast %58 : vector<1x128x16xf32> to vector<128x16xf32>
      %60 = vector.shape_cast %57 : vector<128x16xf32> to vector<1x128x16xf32>
      tpu.vector_store %arg12[%c0_36, %c0_37, %c0_38], %60 {strides = array<i32>} : memref<1x128x16xf32, #tpu.memory_space<vmem>>, vector<1x128x16xf32>,
    } else {
    }
    return
  }
  func.func @transform_0(%arg0: i32, %arg1: i32, %arg2: i32) -> (i32, i32, i32) {
    %c0_i32 = arith.constant 0 : i32
    %c0_i32_0 = arith.constant 0 : i32
    return %arg1, %arg2, %c0_i32 : i32, i32, i32
  }
  func.func @transform_1(%arg0: i32, %arg1: i32, %arg2: i32) -> (i32, i32, i32) {
    %c0_i32 = arith.constant 0 : i32
    %c0_i32_0 = arith.constant 0 : i32
    %c0_i32_1 = arith.constant 0 : i32
    return %arg1, %c0_i32, %c0_i32_0 : i32, i32, i32
  }
  func.func @transform_2(%arg0: i32, %arg1: i32, %arg2: i32) -> (i32, i32, i32) {
    %c0_i32 = arith.constant 0 : i32
    %c0_i32_0 = arith.constant 0 : i32
    %c0_i32_1 = arith.constant 0 : i32
    return %arg1, %c0_i32, %c0_i32_0 : i32, i32, i32
  }
  func.func @transform_3(%arg0: i32, %arg1: i32, %arg2: i32) -> (i32, i32, i32) {
    %c0_i32 = arith.constant 0 : i32
    %c0_i32_0 = arith.constant 0 : i32
    %c0_i32_1 = arith.constant 0 : i32
    return %arg1, %c0_i32, %c0_i32_0 : i32, i32, i32
  }
  func.func @transform_4(%arg0: i32, %arg1: i32, %arg2: i32) -> (i32, i32, i32) {
    %c0_i32 = arith.constant 0 : i32
    %c0_i32_0 = arith.constant 0 : i32
    %c0_i32_1 = arith.constant 0 : i32
    return %arg1, %c0_i32, %c0_i32_0 : i32, i32, i32
  }
  func.func @transform_5(%arg0: i32, %arg1: i32, %arg2: i32) -> (i32, i32) {
    %c0_i32 = arith.constant 0 : i32
    %c0_i32_0 = arith.constant 0 : i32
    %c0_i32_1 = arith.constant 0 : i32
    return %c0_i32, %c0_i32_0 : i32, i32
  }
  func.func @transform_6(%arg0: i32, %arg1: i32, %arg2: i32) -> (i32, i32) {
    %c0_i32 = arith.constant 0 : i32
    %c0_i32_0 = arith.constant 0 : i32
    %c0_i32_1 = arith.constant 0 : i32
    return %c0_i32, %c0_i32_0 : i32, i32
  }
  func.func @transform_7(%arg0: i32, %arg1: i32, %arg2: i32) -> (i32, i32) {
    %c0_i32 = arith.constant 0 : i32
    %c0_i32_0 = arith.constant 0 : i32
    %c0_i32_1 = arith.constant 0 : i32
    return %c0_i32, %c0_i32_0 : i32, i32
  }
  func.func @transform_8(%arg0: i32, %arg1: i32, %arg2: i32) -> (i32, i32) {
    %c0_i32 = arith.constant 0 : i32
    %c0_i32_0 = arith.constant 0 : i32
    %c0_i32_1 = arith.constant 0 : i32
    return %c0_i32, %c0_i32_0 : i32, i32
  }
  func.func @transform_9(%arg0: i32, %arg1: i32, %arg2: i32) -> (i32, i32, i32) {
    %c1_i32 = arith.constant 1 : i32
    %0 = arith.cmpi eq, %arg0, %c1_i32 : i32
    %c0_i32 = arith.constant 0 : i32
    %1 = arith.select %0, %arg1, %c0_i32 : i32
    %c0_i32_0 = arith.constant 0 : i32
    %2 = arith.select %0, %arg2, %c0_i32_0 : i32
    %c0_i32_1 = arith.constant 0 : i32
    %c0_i32_2 = arith.constant 0 : i32
    return %1, %c0_i32_1, %2 : i32, i32, i32
  }
}

module attributes {stable_mosaic.version = 11 : i64} {
  func.func @kernel(%arg0: i32, %arg1: i32, %arg2: i32, %arg3: memref<1x16x128xbf16, #tpu.memory_space<vmem>>, %arg4: memref<1x1x128xf32, #tpu.memory_space<vmem>>, %arg5: memref<1x1x128xf32, #tpu.memory_space<vmem>>, %arg6: memref<1x1x128xf32, #tpu.memory_space<vmem>>, %arg7: memref<1x1x128xf32, #tpu.memory_space<vmem>>, %arg8: memref<128x128xbf16, #tpu.memory_space<vmem>>, %arg9: memref<128x128xbf16, #tpu.memory_space<vmem>>, %arg10: memref<1x128xf32, #tpu.memory_space<vmem>>, %arg11: memref<128x128xbf16, #tpu.memory_space<vmem>>, %arg12: memref<1x128x16xf32, #tpu.memory_space<vmem>>, %arg13: memref<1x128xf32, #tpu.memory_space<vmem>>, %arg14: memref<1x128xf32, #tpu.memory_space<vmem>>) attributes {dimension_semantics = [#tpu.dimension_semantics<arbitrary>, #tpu.dimension_semantics<arbitrary>, #tpu.dimension_semantics<arbitrary>], iteration_bounds = array<i64: 2, 2, 1>, scalar_prefetch = 0 : i64, scratch_operands = 2 : i64, tpu.core_type = #tpu.core_type<tc>, window_params = [{transform_indices = @transform_0, window_bounds = array<i64: 1, 16, 128>}, {transform_indices = @transform_1, window_bounds = array<i64: 1, 1, 128>}, {transform_indices = @transform_2, window_bounds = array<i64: 1, 1, 128>}, {transform_indices = @transform_3, window_bounds = array<i64: 1, 1, 128>}, {transform_indices = @transform_4, window_bounds = array<i64: 1, 1, 128>}, {pipeline_mode = #tpu.pipeline_mode<synchronous>, transform_indices = @transform_5, window_bounds = array<i64: 128, 128>}, {pipeline_mode = #tpu.pipeline_mode<synchronous>, transform_indices = @transform_6, window_bounds = array<i64: 128, 128>}, {pipeline_mode = #tpu.pipeline_mode<synchronous>, transform_indices = @transform_7, window_bounds = array<i64: 1, 128>}, {pipeline_mode = #tpu.pipeline_mode<synchronous>, transform_indices = @transform_8, window_bounds = array<i64: 128, 128>}, {transform_indices = @transform_9, window_bounds = array<i64: 1, 128, 16>}]} {
    %c0 = arith.constant 0 : index
    %c0_0 = arith.constant 0 : index
    %c0_1 = arith.constant 0 : index
    %0 = vector.load %arg3[%c0, %c0_0, %c0_1] : memref<1x16x128xbf16, #tpu.memory_space<vmem>>, vector<1x16x128xbf16>
    %1 = vector.shape_cast %0 : vector<1x16x128xbf16> to vector<16x128xbf16>
    %2 = arith.extf %1 : vector<16x128xbf16> to vector<16x128xf32>
    %c0_i32 = arith.constant 0 : i32
    %3 = arith.cmpi eq, %arg0, %c0_i32 : i32
    %4 = arith.extui %3 : i1 to i32
    %c0_i32_2 = arith.constant 0 : i32
    %5 = arith.cmpi ne, %4, %c0_i32_2 : i32
    scf.if %5 {
      %c0_i32_4 = arith.constant 0 : i32
      %9 = arith.cmpi eq, %arg1, %c0_i32_4 : i32
      %c0_i32_5 = arith.constant 0 : i32
      %10 = arith.cmpi eq, %arg2, %c0_i32_5 : i32
      %11 = arith.andi %9, %10 : i1
      %12 = arith.extui %11 : i1 to i32
      %c0_i32_6 = arith.constant 0 : i32
      %13 = arith.cmpi ne, %12, %c0_i32_6 : i32
      scf.if %13 {
        %cst_26 = arith.constant 0.000000e+00 : f32
        %38 = vector.broadcast %cst_26 : f32 to vector<1x128xf32>
        %c0_27 = arith.constant 0 : index
        %c0_28 = arith.constant 0 : index
        %39 = vector.load %arg13[%c0_27, %c0_28] : memref<1x128xf32, #tpu.memory_space<vmem>>, vector<1x128xf32>
        tpu.vector_store %arg13[%c0_27, %c0_28], %38 {strides = array<i32>} : memref<1x128xf32, #tpu.memory_space<vmem>>, vector<1x128xf32>,
        %cst_29 = arith.constant 0.000000e+00 : f32
        %40 = vector.broadcast %cst_29 : f32 to vector<1x128xf32>
        %c0_30 = arith.constant 0 : index
        %c0_31 = arith.constant 0 : index
        %41 = vector.load %arg14[%c0_30, %c0_31] : memref<1x128xf32, #tpu.memory_space<vmem>>, vector<1x128xf32>
        tpu.vector_store %arg14[%c0_30, %c0_31], %40 {strides = array<i32>} : memref<1x128xf32, #tpu.memory_space<vmem>>, vector<1x128xf32>,
      } else {
      }
      %c0_7 = arith.constant 0 : index
      %c0_8 = arith.constant 0 : index
      %c0_9 = arith.constant 0 : index
      %14 = vector.load %arg4[%c0_7, %c0_8, %c0_9] : memref<1x1x128xf32, #tpu.memory_space<vmem>>, vector<1x1x128xf32>
      %15 = vector.shape_cast %14 : vector<1x1x128xf32> to vector<1x128xf32>
      %16 = vector.broadcast %15 : vector<1x128xf32> to vector<16x128xf32>
      %17 = arith.mulf %16, %2 : vector<16x128xf32>
      %c0_10 = arith.constant 0 : index
      %c0_11 = arith.constant 0 : index
      %c0_12 = arith.constant 0 : index
      %18 = vector.load %arg5[%c0_10, %c0_11, %c0_12] : memref<1x1x128xf32, #tpu.memory_space<vmem>>, vector<1x1x128xf32>
      %19 = vector.shape_cast %18 : vector<1x1x128xf32> to vector<1x128xf32>
      %20 = vector.broadcast %19 : vector<1x128xf32> to vector<16x128xf32>
      %21 = arith.addf %17, %20 : vector<16x128xf32>
      %cst = arith.constant 0.000000e+00 : f32
      %22 = vector.broadcast %cst : f32 to vector<16x128xf32>
      %23 = arith.maximumf %21, %22 : vector<16x128xf32>
      %24 = arith.truncf %23 : vector<16x128xf32> to vector<16x128xbf16>
      %c0_13 = arith.constant 0 : index
      %c0_14 = arith.constant 0 : index
      %25 = vector.load %arg8[%c0_13, %c0_14] : memref<128x128xbf16, #tpu.memory_space<vmem>>, vector<128x128xbf16>
      %cst_15 = arith.constant dense<0.000000e+00> : vector<16x128xf32>
      %26 = tpu.matmul %24, %25, %cst_15 {dimension_numbers = #tpu.dot_dimension_numbers<[1], [0], [0], [1], [0, 0, 1, 1], [], []>} : vector<16x128xbf16>, vector<128x128xbf16>, vector<16x128xf32> -> vector<16x128xf32>
      %c0_16 = arith.constant 0 : index
      %c0_17 = arith.constant 0 : index
      %27 = vector.load %arg13[%c0_16, %c0_17] : memref<1x128xf32, #tpu.memory_space<vmem>>, vector<1x128xf32>
      %cst_18 = arith.constant dense<0.000000e+00> : vector<128xf32>
      %28 = vector.multi_reduction <add>, %26, %cst_18 [0] : vector<16x128xf32> to vector<128xf32>
      %29 = vector.shape_cast %28 : vector<128xf32> to vector<1x128xf32>
      %30 = arith.addf %27, %29 : vector<1x128xf32>
      %c0_19 = arith.constant 0 : index
      %c0_20 = arith.constant 0 : index
      %31 = vector.load %arg13[%c0_19, %c0_20] : memref<1x128xf32, #tpu.memory_space<vmem>>, vector<1x128xf32>
      tpu.vector_store %arg13[%c0_19, %c0_20], %30 {strides = array<i32>} : memref<1x128xf32, #tpu.memory_space<vmem>>, vector<1x128xf32>,
      %c0_21 = arith.constant 0 : index
      %c0_22 = arith.constant 0 : index
      %32 = vector.load %arg14[%c0_21, %c0_22] : memref<1x128xf32, #tpu.memory_space<vmem>>, vector<1x128xf32>
      %33 = arith.mulf %26, %26 : vector<16x128xf32>
      %cst_23 = arith.constant dense<0.000000e+00> : vector<128xf32>
      %34 = vector.multi_reduction <add>, %33, %cst_23 [0] : vector<16x128xf32> to vector<128xf32>
      %35 = vector.shape_cast %34 : vector<128xf32> to vector<1x128xf32>
      %36 = arith.addf %32, %35 : vector<1x128xf32>
      %c0_24 = arith.constant 0 : index
      %c0_25 = arith.constant 0 : index
      %37 = vector.load %arg14[%c0_24, %c0_25] : memref<1x128xf32, #tpu.memory_space<vmem>>, vector<1x128xf32>
      tpu.vector_store %arg14[%c0_24, %c0_25], %36 {strides = array<i32>} : memref<1x128xf32, #tpu.memory_space<vmem>>, vector<1x128xf32>,
    } else {
    }
    %c1_i32 = arith.constant 1 : i32
    %6 = arith.cmpi eq, %arg0, %c1_i32 : i32
    %7 = arith.extui %6 : i1 to i32
    %c0_i32_3 = arith.constant 0 : i32
    %8 = arith.cmpi ne, %7, %c0_i32_3 : i32
    scf.if %8 {
      %c0_4 = arith.constant 0 : index
      %c0_5 = arith.constant 0 : index
      %c0_6 = arith.constant 0 : index
      %9 = vector.load %arg4[%c0_4, %c0_5, %c0_6] : memref<1x1x128xf32, #tpu.memory_space<vmem>>, vector<1x1x128xf32>
      %10 = vector.shape_cast %9 : vector<1x1x128xf32> to vector<1x128xf32>
      %11 = vector.broadcast %10 : vector<1x128xf32> to vector<16x128xf32>
      %12 = arith.mulf %11, %2 : vector<16x128xf32>
      %c0_7 = arith.constant 0 : index
      %c0_8 = arith.constant 0 : index
      %c0_9 = arith.constant 0 : index
      %13 = vector.load %arg5[%c0_7, %c0_8, %c0_9] : memref<1x1x128xf32, #tpu.memory_space<vmem>>, vector<1x1x128xf32>
      %14 = vector.shape_cast %13 : vector<1x1x128xf32> to vector<1x128xf32>
      %15 = vector.broadcast %14 : vector<1x128xf32> to vector<16x128xf32>
      %16 = arith.addf %12, %15 : vector<16x128xf32>
      %cst = arith.constant 0.000000e+00 : f32
      %17 = vector.broadcast %cst : f32 to vector<16x128xf32>
      %18 = arith.maximumf %16, %17 : vector<16x128xf32>
      %19 = arith.truncf %18 : vector<16x128xf32> to vector<16x128xbf16>
      %c0_10 = arith.constant 0 : index
      %c0_11 = arith.constant 0 : index
      %20 = vector.load %arg8[%c0_10, %c0_11] : memref<128x128xbf16, #tpu.memory_space<vmem>>, vector<128x128xbf16>
      %cst_12 = arith.constant dense<0.000000e+00> : vector<16x128xf32>
      %21 = tpu.matmul %19, %20, %cst_12 {dimension_numbers = #tpu.dot_dimension_numbers<[1], [0], [0], [1], [0, 0, 1, 1], [], []>} : vector<16x128xbf16>, vector<128x128xbf16>, vector<16x128xf32> -> vector<16x128xf32>
      %c0_13 = arith.constant 0 : index
      %c0_14 = arith.constant 0 : index
      %22 = vector.load %arg13[%c0_13, %c0_14] : memref<1x128xf32, #tpu.memory_space<vmem>>, vector<1x128xf32>
      %cst_15 = arith.constant 3.125000e-02 : f32
      %23 = vector.broadcast %cst_15 : f32 to vector<1x128xf32>
      %24 = arith.mulf %22, %23 : vector<1x128xf32>
      %c0_16 = arith.constant 0 : index
      %c0_17 = arith.constant 0 : index
      %25 = vector.load %arg14[%c0_16, %c0_17] : memref<1x128xf32, #tpu.memory_space<vmem>>, vector<1x128xf32>
      %cst_18 = arith.constant 3.125000e-02 : f32
      %26 = vector.broadcast %cst_18 : f32 to vector<1x128xf32>
      %27 = arith.mulf %25, %26 : vector<1x128xf32>
      %28 = arith.mulf %24, %24 : vector<1x128xf32>
      %29 = arith.subf %27, %28 : vector<1x128xf32>
      %cst_19 = arith.constant 0.000000e+00 : f32
      %30 = vector.broadcast %cst_19 : f32 to vector<1x128xf32>
      %31 = arith.maximumf %29, %30 : vector<1x128xf32>
      %c0_20 = arith.constant 0 : index
      %c0_21 = arith.constant 0 : index
      %c0_22 = arith.constant 0 : index
      %32 = vector.load %arg6[%c0_20, %c0_21, %c0_22] : memref<1x1x128xf32, #tpu.memory_space<vmem>>, vector<1x1x128xf32>
      %33 = vector.shape_cast %32 : vector<1x1x128xf32> to vector<1x128xf32>
      %cst_23 = arith.constant 9.99999974E-6 : f32
      %34 = vector.broadcast %cst_23 : f32 to vector<1x128xf32>
      %35 = arith.addf %31, %34 : vector<1x128xf32>
      %36 = math.rsqrt %35 : vector<1x128xf32>
      %37 = arith.mulf %33, %36 : vector<1x128xf32>
      %c0_24 = arith.constant 0 : index
      %c0_25 = arith.constant 0 : index
      %c0_26 = arith.constant 0 : index
      %38 = vector.load %arg7[%c0_24, %c0_25, %c0_26] : memref<1x1x128xf32, #tpu.memory_space<vmem>>, vector<1x1x128xf32>
      %39 = vector.shape_cast %38 : vector<1x1x128xf32> to vector<1x128xf32>
      %40 = arith.mulf %37, %24 : vector<1x128xf32>
      %41 = arith.subf %39, %40 : vector<1x128xf32>
      %42 = vector.broadcast %37 : vector<1x128xf32> to vector<16x128xf32>
      %43 = arith.mulf %42, %21 : vector<16x128xf32>
      %44 = vector.broadcast %41 : vector<1x128xf32> to vector<16x128xf32>
      %45 = arith.addf %43, %44 : vector<16x128xf32>
      %cst_27 = arith.constant 0.000000e+00 : f32
      %46 = vector.broadcast %cst_27 : f32 to vector<16x128xf32>
      %47 = arith.maximumf %45, %46 : vector<16x128xf32>
      %48 = arith.truncf %47 : vector<16x128xf32> to vector<16x128xbf16>
      %c0_28 = arith.constant 0 : index
      %c0_29 = arith.constant 0 : index
      %49 = vector.load %arg9[%c0_28, %c0_29] : memref<128x128xbf16, #tpu.memory_space<vmem>>, vector<128x128xbf16>
      %cst_30 = arith.constant dense<0.000000e+00> : vector<16x128xf32>
      %50 = tpu.matmul %48, %49, %cst_30 {dimension_numbers = #tpu.dot_dimension_numbers<[1], [0], [0], [1], [0, 0, 1, 1], [], []>} : vector<16x128xbf16>, vector<128x128xbf16>, vector<16x128xf32> -> vector<16x128xf32>
      %c0_31 = arith.constant 0 : index
      %c0_32 = arith.constant 0 : index
      %51 = vector.load %arg10[%c0_31, %c0_32] : memref<1x128xf32, #tpu.memory_space<vmem>>, vector<1x128xf32>
      %52 = vector.broadcast %51 : vector<1x128xf32> to vector<16x128xf32>
      %53 = arith.addf %50, %52 : vector<16x128xf32>
      %c0_33 = arith.constant 0 : index
      %c0_34 = arith.constant 0 : index
      %54 = vector.load %arg11[%c0_33, %c0_34] : memref<128x128xbf16, #tpu.memory_space<vmem>>, vector<128x128xbf16>
      %cst_35 = arith.constant dense<0.000000e+00> : vector<16x128xf32>
      %55 = tpu.matmul %1, %54, %cst_35 {dimension_numbers = #tpu.dot_dimension_numbers<[1], [0], [0], [1], [0, 0, 1, 1], [], []>} : vector<16x128xbf16>, vector<128x128xbf16>, vector<16x128xf32> -> vector<16x128xf32>
      %56 = arith.addf %53, %55 : vector<16x128xf32>
      %57 = tpu.transpose %56, [1, 0] : vector<16x128xf32> -> vector<128x16xf32>
      %c0_36 = arith.constant 0 : index
      %c0_37 = arith.constant 0 : index
      %c0_38 = arith.constant 0 : index
      %58 = vector.load %arg12[%c0_36, %c0_37, %c0_38] : memref<1x128x16xf32, #tpu.memory_space<vmem>>, vector<1x128x16xf32>
      %59 = vector.shape_cast %58 : vector<1x128x16xf32> to vector<128x16xf32>
      %60 = vector.shape_cast %57 : vector<128x16xf32> to vector<1x128x16xf32>
      tpu.vector_store %arg12[%c0_36, %c0_37, %c0_38], %60 {strides = array<i32>} : memref<1x128x16xf32, #tpu.memory_space<vmem>>, vector<1x128x16xf32>,
    } else {
    }
    return
  }
  func.func @transform_0(%arg0: i32, %arg1: i32, %arg2: i32) -> (i32, i32, i32) {
    %c0_i32 = arith.constant 0 : i32
    %c0_i32_0 = arith.constant 0 : i32
    return %arg1, %arg2, %c0_i32 : i32, i32, i32
  }
  func.func @transform_1(%arg0: i32, %arg1: i32, %arg2: i32) -> (i32, i32, i32) {
    %c0_i32 = arith.constant 0 : i32
    %c0_i32_0 = arith.constant 0 : i32
    %c0_i32_1 = arith.constant 0 : i32
    return %arg1, %c0_i32, %c0_i32_0 : i32, i32, i32
  }
  func.func @transform_2(%arg0: i32, %arg1: i32, %arg2: i32) -> (i32, i32, i32) {
    %c0_i32 = arith.constant 0 : i32
    %c0_i32_0 = arith.constant 0 : i32
    %c0_i32_1 = arith.constant 0 : i32
    return %arg1, %c0_i32, %c0_i32_0 : i32, i32, i32
  }
  func.func @transform_3(%arg0: i32, %arg1: i32, %arg2: i32) -> (i32, i32, i32) {
    %c0_i32 = arith.constant 0 : i32
    %c0_i32_0 = arith.constant 0 : i32
    %c0_i32_1 = arith.constant 0 : i32
    return %arg1, %c0_i32, %c0_i32_0 : i32, i32, i32
  }
  func.func @transform_4(%arg0: i32, %arg1: i32, %arg2: i32) -> (i32, i32, i32) {
    %c0_i32 = arith.constant 0 : i32
    %c0_i32_0 = arith.constant 0 : i32
    %c0_i32_1 = arith.constant 0 : i32
    return %arg1, %c0_i32, %c0_i32_0 : i32, i32, i32
  }
  func.func @transform_5(%arg0: i32, %arg1: i32, %arg2: i32) -> (i32, i32) {
    %c0_i32 = arith.constant 0 : i32
    %c0_i32_0 = arith.constant 0 : i32
    %c0_i32_1 = arith.constant 0 : i32
    return %c0_i32, %c0_i32_0 : i32, i32
  }
  func.func @transform_6(%arg0: i32, %arg1: i32, %arg2: i32) -> (i32, i32) {
    %c0_i32 = arith.constant 0 : i32
    %c0_i32_0 = arith.constant 0 : i32
    %c0_i32_1 = arith.constant 0 : i32
    return %c0_i32, %c0_i32_0 : i32, i32
  }
  func.func @transform_7(%arg0: i32, %arg1: i32, %arg2: i32) -> (i32, i32) {
    %c0_i32 = arith.constant 0 : i32
    %c0_i32_0 = arith.constant 0 : i32
    %c0_i32_1 = arith.constant 0 : i32
    return %c0_i32, %c0_i32_0 : i32, i32
  }
  func.func @transform_8(%arg0: i32, %arg1: i32, %arg2: i32) -> (i32, i32) {
    %c0_i32 = arith.constant 0 : i32
    %c0_i32_0 = arith.constant 0 : i32
    %c0_i32_1 = arith.constant 0 : i32
    return %c0_i32, %c0_i32_0 : i32, i32
  }
  func.func @transform_9(%arg0: i32, %arg1: i32, %arg2: i32) -> (i32, i32, i32) {
    %c1_i32 = arith.constant 1 : i32
    %0 = arith.cmpi eq, %arg0, %c1_i32 : i32
    %c0_i32 = arith.constant 0 : i32
    %1 = arith.select %0, %arg1, %c0_i32 : i32
    %c0_i32_0 = arith.constant 0 : i32
    %2 = arith.select %0, %arg2, %c0_i32_0 : i32
    %c0_i32_1 = arith.constant 0 : i32
    %c0_i32_2 = arith.constant 0 : i32
    return %1, %c0_i32_1, %2 : i32, i32, i32
  }
}

</mosaic_0001>

<bundles_post_ra>
// kernel: tpu_custom_call.1
= control target key start
LH: loop header
LB: loop body
LE: loop exit
PB: predicated region body
PF: predicated region fallthrough
CT: control target
= control target key end

     0   :  { %s2232_s0 = inlined_call_operand.hbm [shape: bf16[2,16,128], index: 0, kind: input, shape index: {}]   ;;  %s2233_s1 = inlined_call_operand.vmem [shape: f32[2,1,128], index: 1, kind: input, shape index: {}]   ;;  %s2234_s2 = inlined_call_operand.vmem [shape: f32[2,1,128], index: 2, kind: input, shape index: {}]   ;;  %s2235_s3 = inlined_call_operand.vmem [shape: f32[2,1,128], index: 3, kind: input, shape index: {}]   ;;  %s2236_s4 = inlined_call_operand.vmem [shape: f32[2,1,128], index: 4, kind: input, shape index: {}]   ;;  %s2237_s5 = inlined_call_operand.hbm [shape: bf16[128,128], index: 5, kind: input, shape index: {}]   ;;  %s2238_s6 = inlined_call_operand.hbm [shape: bf16[128,128], index: 6, kind: input, shape index: {}]   ;;  %s2239_s7 = inlined_call_operand.vmem [shape: f32[1,128], index: 7, kind: input, shape index: {}]   ;;  %s2240_s8 = inlined_call_operand.hbm [shape: bf16[128,128], index: 8, kind: input, shape index: {}]   ;;  %s2241_s9 = inlined_call_operand.vmem [shape: f32[2,128,16], index: 9, kind: output, shape index: {}]  }
   0x1   :  { %2246 = sst [smem:[#allocation14_spill]] %s2232_s0 }
   0x2   :  { %2247 = sst [smem:[#allocation15_spill]] %s2234_s2 }
   0x3   :  { %2248 = sst [smem:[#allocation16_spill]] %s2235_s3 }
   0x4   :  { %2249 = sst [smem:[#allocation17_spill]] %s2236_s4 }
   0x5   :  { %2250 = sst [smem:[#allocation18_spill]] %s2237_s5 }
   0x6   :  { %2251 = sst [smem:[#allocation19_spill]] %s2239_s7 }
   0x7   :  { %2252 = sst [smem:[#allocation20_spill]] %s2241_s9 }
   0x8   :  { %14 = vsyncpa [#allocation5], 0 }
   0x9   :  { %16 = vsyncpa [#allocation5 + $0x1], 0 }
   0xa   :  { %17 = vsyncpa [#allocation7], 0 }
   0xb   :  { %18 = vsyncpa [#allocation10], 0  ;;  %s1853_s30 = smov 0   ;;  %s1855_s10 = smov 0  }
   0xc   :  { %s1857_s11 = smov 0   ;;  %s1859_s12 = smov 0  }
   0xd   :  { %s1861_s13 = smov 0   ;;  %s1863_s14 = smov 0  }
   0xe   :  { %s1865_s15 = smov 0   ;;  %s1867_s16 = smov 0  }
   0xf LB: > { %s1274_s17 = sadd.s32 4294967295, %s1790_s16   ;;  %p65_p0 = scmp.ne.s32.totalorder %s1766_s10, %s1762_s30  ;;  %s1790_s16 = sphi %s1867_s16, %s24_s16   ;;  %s1786_s15 = sphi %s1865_s15, %s2277_s15   ;;  %s1782_s14 = sphi %s1863_s14, %s2276_s14   ;;  %s1778_s13 = sphi %s1861_s13, %s2275_s13   ;;  %s1774_s12 = sphi %s1859_s12, %s2274_s12   ;;  %s1770_s11 = sphi %s1857_s11, %s2273_s11   ;;  %s1766_s10 = sphi %s1855_s10, %s2272_s10   ;;  %s1762_s30 = sphi %s1853_s30, %s2271_s30  }
  0x10   : > { %p1893_p1 = scmp.eq.s32.totalorder %s1274_s17, 0  ;;  %p1276_p2 = scmp.ge.s32.totalorder %s1790_s16, 1 }
  0x11   : > { %p298_p3 = scmp.lt.s32.totalorder %s1790_s16, 5  ;;  %s1792_s21 = smov [#allocation6]  }
  0x12   : > { %s2253_s18 = scalar_select %p1893_p1, 1, 0 }
  0x13   : > { %p1901_p4 = por %p1893_p1, %p65_p0  ;;  %p1905_p5 = pnand %p1276_p2, %p298_p3 }
  0x14   : > { %s310_s22 = sshll.u32 %s1792_s21, 4  ;;  %s1793_s24 = smov [#allocation8]   ;;  %s1909_s22 = int_to_ptr.vmem [resolvable:$true] %s310_s22 }
  0x15   : > { %s2254_s19 = scalar_select %p1901_p4, 1, 0 }
  0x16   : > { %s2255_s20 = scalar_select %p1905_p5, 1, 0 }
  0x17   : > { %p1473_p6 = pneg %p1905_p5  ;;  %s323_s25 = sshll.u32 %s1793_s24, 4  ;;  %s1919_s25 = int_to_ptr.vmem [resolvable:$true] %s323_s25 }
  0x18   : > { %s1794_s26 = smov [#allocation9]   ;;  %s2257_s5 = sld [smem:[#allocation18_spill]] }
  0x19   : > { %p1915_p7 = pnand %p1473_p6, %p1893_p1  ;;  %s1921_s27 = sshll.u32 %s1794_s26, 4  ;;  %s340_s27 = int_to_ptr.vmem [resolvable:$true] %s1921_s27 }
  0x1b   : > { %p1931_p9 = pneg %p1915_p7 }
  0x1e   : > { %s1602_s30 = scalar_lea.hbm %s2257_s5, 1024 }
  0x1f   : > { %p1603_p8 = scmp.ne.s32.totalorder %s2257_s5, %s1602_s30  ;;  %p1609_p12 = scmp.lt.u32.totalorder %s1602_s30, %s2257_s5 }
  0x21   : > { %p1605_p10 = pnand %p1931_p9, %p1603_p8 }
  0x23   : > { %p1606_p11 = pneg %p1605_p10 }
  0x25   : > { %p1611_p13 = pnand %p1609_p12, %p1606_p11 }
  0x27   : > { %1614 = shalt.err (!%p1611_p13)
}
  0x28   : > { %s1615_s28 = scalar_lea.vmem %s1909_s22, 1024  ;;  %p1623_p6 = scmp.lt.s32.totalorder %s1909_s22, %s1909_s22 }
  0x29   : > { %p1616_p0 = scmp.ne.s32.totalorder %s1909_s22, %s1615_s28  ;;  %p1624_p1 = scmp.lt.s32.totalorder %s1615_s28, %s1615_s28 }
  0x2b   : > { %p1618_p2 = pnand %p1616_p0, %p1931_p9  ;;  %p1625_p8 = por %p1624_p1, %p1623_p6 }
  0x2d   : > { %p1619_p3 = pneg %p1618_p2 }
  0x2f   : > { %p1626_p10 = pnand %p1625_p8, %p1619_p3 }
  0x31   : > { %1629 = shalt.err (!%p1626_p10)
}
  0x32   : > { %s1795_s29 = smov 64   ;;  %s1796_s30 = smov 4  }
  0x33   : > { %1476 = dma.hbm_to_vmem [thread:$0]  (!%p1915_p7), %s2257_s5, 1024, %s1909_s22, [#allocation7], %s1795_s29, %s1795_s29, %s1796_s30  }
  0x34   : > { %s1630_s28 = scalar_lea.hbm %s2238_s6, 1024 }
  0x35   : > { %p1631_p1 = scmp.ne.s32.totalorder %s2238_s6, %s1630_s28  ;;  %p1637_p13 = scmp.lt.u32.totalorder %s1630_s28, %s2238_s6 }
  0x37   : > { %p1633_p11 = pnand %p1631_p1, %p1931_p9 }
  0x39   : > { %p1634_p12 = pneg %p1633_p11 }
  0x3b   : > { %p1639_p0 = pnand %p1637_p13, %p1634_p12 }
  0x3d   : > { %1642 = shalt.err (!%p1639_p0)
}
  0x3e   : > { %s1643_s22 = scalar_lea.vmem %s1919_s25, 1024  ;;  %p1651_p8 = scmp.lt.s32.totalorder %s1919_s25, %s1919_s25 }
  0x3f   : > { %p1644_p2 = scmp.ne.s32.totalorder %s1919_s25, %s1643_s22  ;;  %p1652_p10 = scmp.lt.s32.totalorder %s1643_s22, %s1643_s22 }
  0x41   : > { %p1646_p3 = pnand %p1644_p2, %p1931_p9  ;;  %p1653_p1 = por %p1652_p10, %p1651_p8 }
  0x43   : > { %p1647_p6 = pneg %p1646_p3 }
  0x45   : > { %p1654_p11 = pnand %p1653_p1, %p1647_p6 }
  0x47   : > { %1657 = shalt.err (!%p1654_p11)
}
  0x48   : > { %1479 = dma.hbm_to_vmem [thread:$0]  (!%p1915_p7), %s2238_s6, 1024, %s1919_s25, [#allocation7], %s1795_s29, %s1795_s29, %s1796_s30  }
  0x49   : > { %s1658_s17 = scalar_lea.hbm %s2240_s8, 1024 }
  0x4a   : > { %p1659_p12 = scmp.ne.s32.totalorder %s2240_s8, %s1658_s17  ;;  %p1665_p2 = scmp.lt.u32.totalorder %s1658_s17, %s2240_s8 }
  0x4c   : > { %p1661_p13 = pnand %p1659_p12, %p1931_p9 }
  0x4e   : > { %p1662_p0 = pneg %p1661_p13 }
  0x50   : > { %p1667_p3 = pnand %p1665_p2, %p1662_p0 }
  0x52   : > { %1670 = shalt.err (!%p1667_p3)
}
  0x53   : > { %s1671_s22 = scalar_lea.vmem %s340_s27, 1024  ;;  %p1679_p1 = scmp.lt.s32.totalorder %s340_s27, %s340_s27 }
  0x54   : > { %p1672_p6 = scmp.ne.s32.totalorder %s340_s27, %s1671_s22  ;;  %p1680_p11 = scmp.lt.s32.totalorder %s1671_s22, %s1671_s22 }
  0x56   : > { %p1674_p8 = pnand %p1672_p6, %p1931_p9  ;;  %p1681_p4 = por %p1680_p11, %p1679_p1 }
  0x58   : > { %p1675_p10 = pneg %p1674_p8 }
  0x5a   : > { %p1682_p5 = pnand %p1681_p4, %p1675_p10 }
  0x5c   : > { %1685 = shalt.err (!%p1682_p5)
}
  0x5d   : > { %1482 = dma.hbm_to_vmem [thread:$0]  (!%p1915_p7), %s2240_s8, 1024, %s340_s27, [#allocation10], %s1795_s29, %s1795_s29, %s1796_s30  }
  0x5e   : > { %s39_s7 = sadd.s32 1, %s1782_s14  ;;  %s43_s23 = sadd.s32 1, %s1786_s15 }
  0x5f   : > { %p41_p4 = scmp.ge.s32.totalorder %s39_s7, 2  ;;  %s52_s3 = sadd.s32 1, %s1770_s11 }
  0x60   : > { %p59_p5 = scmp.ne.s32.totalorder %s1770_s11, %s1766_s10  ;;  %p60_p9 = scmp.eq.s32.totalorder %s1790_s16, 0 }
  0x61   : > { %s2279_s7 = smov (%p41_p4, %s39_s7), 0  ;;  %s2281_s23 = smov (!%p41_p4, %s43_s23), %s1786_s15 }
  0x62   : > { %s47_s4 = ssub.s32 %s1782_s14, %s2279_s7  ;;  %p45_p12 = scmp.ge.s32.totalorder %s2281_s23, 2 }
  0x63   : > { %p50_p13 = scmp.eq.s32.totalorder %s47_s4, 0  ;;  %p61_p0 = por %p60_p9, %p59_p5 }
  0x64   : > { %p1490_p2 = scmp.lt.s32.totalorder %s1790_s16, 4  ;;  %s2283_s23 = smov (%p45_p12, %s2281_s23), 0 }
  0x65   : > { %s2018_s27 = scalar_select %p50_p13, %s1770_s11, %s52_s3  }
  0x66   : > { %s353_s9 = sand.u32 1, %s1770_s11   ;;  %s1334_s17 = sshll.u32 %s1782_s14, 7 }
  0x67   : > { %s1281_s21 = sshll.u32 %s353_s9, 3  ;;  %s2259_s0 = sld [smem:[#allocation14_spill]] }
  0x68   : > { %s357_s22 = scalar_lea.vmem [#allocation4], %s1281_s21  ;;  %p2027_p7 = pnand %p1490_p2, %p61_p0 }
  0x69   : > { %s366_s25 = sshll.u32 %s357_s22, 4  ;;  %s2033_s3 = scalar_lea.sflag [#allocation5], %s353_s9  ;;  %s2031_s25 = int_to_ptr.vmem [resolvable:$true] %s366_s25 }
  0x6a   : > { %p1688_p6 = pneg %p2027_p7 }
  0x6d   : > { %s2025_s28 = scalar_lea.hbm %s2259_s0, %s1334_s17  ;;  %s1691_s24 = scalar_lea.hbm %s2259_s0, 256 }
  0x6e   : > { %s1686_s4 = scalar_lea.hbm %s2025_s28, 128  ;;  %p1692_p1 = scmp.lt.u32.totalorder %s2025_s28, %s2259_s0 }
  0x6f   : > { %p1687_p3 = scmp.ne.s32.totalorder %s2025_s28, %s1686_s4  ;;  %p1693_p11 = scmp.lt.u32.totalorder %s1691_s24, %s1686_s4 }
  0x70   : > { %p1695_p5 = scmp.lt.u32.totalorder %s1686_s4, %s2025_s28 }
  0x71   : > { %p1689_p8 = pnand %p1688_p6, %p1687_p3  ;;  %p1694_p4 = por %p1693_p11, %p1692_p1 }
  0x73   : > { %p1690_p10 = pneg %p1689_p8  ;;  %p1696_p9 = por %p1695_p5, %p1694_p4 }
  0x75   : > { %p1697_p12 = pnand %p1696_p9, %p1690_p10 }
  0x77   : > { %1700 = shalt.err (!%p1697_p12)
}
  0x78   : > { %s1701_s9 = scalar_lea.vmem %s2031_s25, 128  ;;  %s1797_s17 = smov [#allocation4]  }
  0x79   : > { %p1702_p13 = scmp.ne.s32.totalorder %s2031_s25, %s1701_s9  ;;  %s1706_s21 = sshll.u32 %s1797_s17, 4  ;;  %s1707_s21 = int_to_ptr.vmem [resolvable:$false] %s1706_s21 }
  0x7a   : > { %s1708_s26 = scalar_lea.vmem %s1707_s21, 256  ;;  %p1709_p3 = scmp.lt.s32.totalorder %s2031_s25, %s1707_s21 }
  0x7b   : > { %p1704_p0 = pnand %p1702_p13, %p1688_p6  ;;  %p1710_p8 = scmp.lt.s32.totalorder %s1708_s26, %s1701_s9 }
  0x7d   : > { %p1705_p2 = pneg %p1704_p0  ;;  %p1711_p1 = por %p1710_p8, %p1709_p3 }
  0x7f   : > { %p1712_p11 = pnand %p1711_p1, %p1705_p2 }
  0x81   : > { %1715 = shalt.err (!%p1712_p11)
}
  0x82   : > { %1486 = dma.hbm_to_vmem [thread:$0]  (!%p2027_p7), %s2025_s28, 128, %s2031_s25, %s2033_s3, %s1795_s29, %s1795_s29, %s1796_s30  }
  0x83   : > { %p2261_p6 = scmp.ne.s32.totalorder %s2255_s20, 0 }
  0x84   : > { %s404_s4 = sand.u32 (!%p2261_p6), 1, %s1766_s10   ;;  %p2262_p10 = scmp.ne.s32.totalorder (!%p2261_p6), %s2254_s19, 0 }
  0x85   : > { %402 = sbr.rel (%p2261_p6) target bundleno = 1126 (0x466), region = 56  ;;  %s1285_s24 = sshll.u32 (!%p2261_p6), %s404_s4, 3 }
  0x86   : > { %s405_s22 = scalar_lea.sflag (!%p2261_p6), [#allocation5], %s404_s4  ;;  %s408_s9 = scalar_lea.vmem (!%p2261_p6), [#allocation4], %s1285_s24 }
  0x8c   : > { %1749 = dma.done.wait (%p2262_p10), %s405_s22, 128  }
  0x8d   : > { %1751 = vsyncadd (%p2262_p10), %s405_s22, 4294967168  ;;  %p2263_p4 = scmp.ne.s32.totalorder %s2253_s18, 0 }
  0x8f   : > { %1753 = dma.done.wait (%p2263_p4), [#allocation7], 2048  }
  0x90   : > { %1755 = vsyncadd (%p2263_p4), [#allocation7], 4294965248 }
  0x91   : > { %1757 = dma.done.wait (%p2263_p4), [#allocation10], 1024  }
  0x92   : > { %1759 = vsyncadd (%p2263_p4), [#allocation10], 4294966272  ;;  %p474_p7 = scmp.lt.s32.totalorder %s1774_s12, 1  ;;  %p486_p5 = scmp.eq.s32.totalorder %s1778_s13, 1  ;;  %v2105_v0 = vld [vmem:[%s408_s9] sm:$0xf] }
  0x93   : > { %s2264_s2 = sld [smem:[#allocation15_spill]]  ;;  %s2265_s26 = sld [smem:[#allocation16_spill]]  ;;  %v2107_v1 = vld [vmem:[%s408_s9 + $0x4] sm:$0xf]  ;;  %v503_v2 = vunpack.c.l.bf16 %v2105_v0 }
  0x94   : > { %s2082_s19 = scalar_select %p474_p7, %s1774_s12, 1  ;;  %v504_v3 = vunpack.c.l.bf16 %v2107_v1 }
  0x95   : > { %s487_s20 = scalar_select %p486_p5, %s1774_s12, 0 }
  0x96   : > { %s2089_s28 = scalar_lea.vmem %s2233_s1, %s2082_s19  ;;  %s2266_s0 = sld [smem:[#allocation17_spill]] }
  0x97   : > { %p489_p9 = scmp.lt.s32.totalorder %s487_s20, 1  ;;  %s2267_s25 = sld [smem:[#allocation20_spill]] }
  0x98   : > { %p1291_p12 = scmp.ne.s32.totalorder %s1778_s13, 0 }
  0x99   : > { %s2095_s3 = scalar_lea.vmem %s2264_s2, %s2082_s19  ;;  %s482_s4 = scalar_lea.vmem %s2265_s26, %s2082_s19 }
  0x9a   : > { %s2285_s20 = smov (!%p489_p9, %s487_s20), 1  ;;  %508 = sbr.rel (%p1291_p12) target bundleno = 434 (0x1b2), region = 76 }
  0x9b   : > { %s1335_s29 = sshll.u32 %s2285_s20, 7  ;;  %p509_p13 = scmp.eq.s32.totalorder (!%p1291_p12), %s1774_s12, 0 }
  0x9c   : > { %s485_s5 = scalar_lea.vmem %s2266_s0, %s2082_s19 }
  0x9d   : > { %s2114_s2 = scalar_lea.vmem %s2267_s25, %s1335_s29 }
  0xa1   : > { %514 = sbr.rel (!%p509_p13) target bundleno = 168 (0xa8), region = 80  ;;  %v1798_v4 = vmov (%p509_p13), 0.0  }
  0xa2   : > { %515 = vst [vmem:[#allocation2] sm:$0x1] (%p509_p13), %v1798_v4  ;;  %516 = vst [vmem:[#allocation3] sm:$0x1] (%p509_p13), %v1798_v4 }
  0xa8 PF: > { %v1568_v5 = vld [vmem:[#allocation6] sm:$0xff]   ;;  %v1799_v6 = vmov 0.0   ;;  %v1569_v7 = vld [vmem:[#allocation6 + $0x8] sm:$0xff]   ;;  %vm1800_vm0 = vmmov 0   ;;  %v1570_v8 = vld [vmem:[#allocation6 + $0x10] sm:$0xff]  }
  0xa9   : > { %1373 = vmatprep.subr.bf16.mxu0 %v1799_v6  ;;  %1389 = vmatprep.mubr.msk.bf16.mxu0 %vm1800_vm0, %v1799_v6  ;;  %v1571_v9 = vld [vmem:[#allocation6 + $0x18] sm:$0xff]   ;;  %v1572_v10 = vld [vmem:[#allocation6 + $0x20] sm:$0xff]   ;;  %v1293_v11 = vld [vmem:[%s2089_s28] ss:$0 sm:$0xff] }
  0xaa   : > { %1374 = vmatpush3.bf16.msra.mxu0 %v1568_v5  ;;  %v524_v12 = vmul.f32 %v1293_v11, %v503_v2  ;;  %v525_v13 = vmul.f32 %v1293_v11, %v504_v3  ;;  %v1573_v14 = vld [vmem:[#allocation6 + $0x28] sm:$0xff]   ;;  %v1574_v18 = vld [vmem:[#allocation6 + $0x30] sm:$0xff]   ;;  %v1575_v21 = vld [vmem:[#allocation6 + $0x38] sm:$0xff]  }
  0xab   : > { %1375 = vmatprep.subr.bf16.mxu0 %v1799_v6  ;;  %v1294_v15 = vld [vmem:[%s2095_s3] ss:$0 sm:$0xff]  ;;  %v653_v43 = vld [vmem:[#allocation3] sm:$0x1] }
  0xac   : > { %v533_v16 = vadd.f32 %v1294_v15, %v524_v12  ;;  %v534_v17 = vadd.f32 %v1294_v15, %v525_v13  ;;  %v643_v40 = vld [vmem:[#allocation2] sm:$0x1] }
  0xae   : > { %1376 = vmatpush3.bf16.msra.mxu0 %v1569_v7  ;;  %v535_v19 = vmax.f32 %v533_v16, 0.0  ;;  %v536_v20 = vmax.f32 %v534_v17, 0.0 }
  0xaf   : > { %1377 = vmatprep.subr.bf16.mxu0 %v1799_v6 }
  0xb0   : > { %v537_v22 = vpack.c.bf16 %v536_v20, %v535_v19 }
  0xb2   : > { %1378 = vmatpush3.bf16.msra.mxu0 %v1570_v8 }
  0xb3   : > { %1379 = vmatprep.subr.bf16.mxu0 %v1799_v6 }
  0xb6   : > { %1380 = vmatpush3.bf16.msra.mxu0 %v1571_v9 }
  0xb7   : > { %1381 = vmatprep.subr.bf16.mxu0 %v1799_v6 }
  0xba   : > { %1382 = vmatpush3.bf16.msra.mxu0 %v1572_v10 }
  0xbb   : > { %1383 = vmatprep.subr.bf16.mxu0 %v1799_v6 }
  0xbe   : > { %1384 = vmatpush3.bf16.msra.mxu0 %v1573_v14 }
  0xbf   : > { %1385 = vmatprep.subr.bf16.mxu0 %v1799_v6 }
  0xc2   : > { %1386 = vmatpush3.bf16.msra.mxu0 %v1574_v18 }
  0xc3   : > { %1387 = vmatprep.subr.bf16.mxu0 %v1799_v6 }
  0xc6   : > { %1388 = vmatpush3.bf16.msra.mxu0 %v1575_v21 }
  0xc9   : > { %1390 = vmatmul.mubr.bf16.vlgmr.msra.gmra.mrb[0].mxu0 %v537_v22 }
 0x19c   : > { %v636_v23 = vpop.f32.mrb[0].mxu0 }
 0x19d   : > { %v1391_v24 = vpop.f32.mrb[1].mxu0  ;;  %v654_v26 = vmul.f32 %v636_v23, %v636_v23 }
 0x19e   : > { %v639_v25 = vpop.f32.mrb[2].mxu0 }
 0x19f   : > { %v644_v27 = vadd.f32 %v639_v25, %v636_v23  ;;  %v655_v28 = vmul.f32 %v639_v25, %v639_v25  ;;  %v1392_v29 = vpop.f32.mrb[3].mxu0 }
 0x1a1   : > { %v645_v30 = vrot.slane %v644_v27, 4  ;;  %v656_v31 = vadd.f32 %v655_v28, %v654_v26 }
 0x1a3   : > { %v646_v32 = vadd.f32 %v645_v30, %v644_v27  ;;  %v657_v33 = vrot.slane %v656_v31, 4 }
 0x1a5   : > { %v647_v34 = vrot.slane %v646_v32, 2  ;;  %v658_v35 = vadd.f32 %v657_v33, %v656_v31 }
 0x1a7   : > { %v648_v36 = vadd.f32 %v647_v34, %v646_v32  ;;  %v659_v37 = vrot.slane %v658_v35, 2 }
 0x1a9   : > { %v649_v38 = vrot.slane %v648_v36, 1  ;;  %v660_v39 = vadd.f32 %v659_v37, %v658_v35 }
 0x1ab   : > { %v650_v41 = vadd.f32 %v649_v38, %v648_v36  ;;  %v661_v42 = vrot.slane %v660_v39, 1 }
 0x1ad   : > { %v651_v44 = vadd.f32 %v650_v41, %v643_v40  ;;  %v662_v45 = vadd.f32 %v661_v42, %v660_v39 }
 0x1af   : > { %652 = vst [vmem:[#allocation2] sm:$0x1] %v651_v44  ;;  %v663_v46 = vadd.f32 %v662_v45, %v653_v43 }
 0x1b1   : > { %664 = vst [vmem:[#allocation3] sm:$0x1] %v663_v46 }
 0x1b2 PF: > { %p1303_p0 = scmp.ne.s32.totalorder %s1778_s13, 1 }
 0x1b3   : > { %v1576_v47 = vld [vmem:[#allocation6] sm:$0xff] (!%p1303_p0)   ;;  %v1801_v48 = vmov (!%p1303_p0), 0.0   ;;  %v1577_v49 = vld [vmem:[#allocation6 + $0x8] sm:$0xff] (!%p1303_p0)   ;;  %vm1802_vm1 = vmmov (!%p1303_p0), 0   ;;  %v1578_v50 = vld [vmem:[#allocation6 + $0x10] sm:$0xff] (!%p1303_p0)   ;;  %v810_v21 = vlaneseq (!%p1303_p0)  ;;  %vm1085_vm2 = vcmask (!%p1303_p0), 130048  }
 0x1b4   : > { %668 = sbr.rel (%p1303_p0) target bundleno = 1126 (0x466), region = 84  ;;  %1393 = vmatprep.subr.bf16.mxu0 (!%p1303_p0), %v1801_v48  ;;  %1413 = vmatprep.subr.bf16.mxu1 (!%p1303_p0), %v1801_v48  ;;  %v1584_v51 = vld [vmem:[#allocation8] sm:$0xff] (!%p1303_p0)   ;;  %v1579_v52 = vld [vmem:[#allocation6 + $0x18] sm:$0xff] (!%p1303_p0)   ;;  %v1585_v53 = vld [vmem:[#allocation8 + $0x8] sm:$0xff] (!%p1303_p0)  }
 0x1b5   : > { %1394 = vmatpush3.bf16.msra.mxu0 (!%p1303_p0), %v1576_v47  ;;  %1409 = vmatprep.mubr.msk.bf16.mxu0 (!%p1303_p0), %vm1802_vm1, %v1801_v48  ;;  %v1580_v54 = vld [vmem:[#allocation6 + $0x20] sm:$0xff] (!%p1303_p0)   ;;  %v1304_v55 = vld [vmem:[%s2089_s28] ss:$0 sm:$0xff] (!%p1303_p0)  ;;  %v1586_v56 = vld [vmem:[#allocation8 + $0x10] sm:$0xff] (!%p1303_p0)   ;;  %v811_v23 = vshrl.u32 (!%p1303_p0), %v810_v21, 7 }
 0x1b6   : > { %1395 = vmatprep.subr.bf16.mxu0 (!%p1303_p0), %v1801_v48  ;;  %1429 = vmatprep.mubr.msk.bf16.mxu1 (!%p1303_p0), %vm1802_vm1, %v1801_v48  ;;  %v1581_v57 = vld [vmem:[#allocation6 + $0x28] sm:$0xff] (!%p1303_p0)   ;;  %v676_v59 = vmul.f32 (!%p1303_p0), %v1304_v55, %v503_v2  ;;  %v677_v60 = vmul.f32 (!%p1303_p0), %v1304_v55, %v504_v3  ;;  %v1587_v61 = vld [vmem:[#allocation8 + $0x18] sm:$0xff] (!%p1303_p0)   ;;  %v1582_v4 = vld [vmem:[#allocation6 + $0x30] sm:$0xff] (!%p1303_p0)  }
 0x1b7   : > { %1414 = vmatpush3.bf16.msra.mxu1 (!%p1303_p0), %v1584_v51  ;;  %v1305_v58 = vld [vmem:[%s2095_s3] ss:$0 sm:$0xff] (!%p1303_p0)  ;;  %v1588_v5 = vld [vmem:[#allocation8 + $0x20] sm:$0xff] (!%p1303_p0)   ;;  %v1583_v3 = vld [vmem:[#allocation6 + $0x38] sm:$0xff] (!%p1303_p0)   ;;  %v812_v26 = vsub.s32 (!%p1303_p0), 0, %v811_v23  ;;  %s2270_s3 = sld [smem:[#allocation19_spill]] (!%p1303_p0) }
 0x1b8   : > { %1415 = vmatprep.subr.bf16.mxu1 (!%p1303_p0), %v1801_v48  ;;  %v685_v62 = vadd.f32 (!%p1303_p0), %v1305_v58, %v676_v59  ;;  %v686_v63 = vadd.f32 (!%p1303_p0), %v1305_v58, %v677_v60  ;;  %v1589_v7 = vld [vmem:[#allocation8 + $0x28] sm:$0xff] (!%p1303_p0)   ;;  %v1590_v9 = vld [vmem:[#allocation8 + $0x30] sm:$0xff] (!%p1303_p0)   ;;  %v1591_v10 = vld [vmem:[#allocation8 + $0x38] sm:$0xff] (!%p1303_p0)  }
 0x1b9   : > { %1396 = vmatpush3.bf16.msra.mxu0 (!%p1303_p0), %v1577_v49  ;;  %v795_v11 = vld [vmem:[#allocation2] sm:$0x1] (!%p1303_p0)  ;;  %v797_v13 = vld [vmem:[#allocation3] sm:$0x1] (!%p1303_p0)  ;;  %v1592_v40 = vld [vmem:[#allocation9] sm:$0xff] (!%p1303_p0)  }
 0x1ba   : > { %1397 = vmatprep.subr.bf16.mxu0 (!%p1303_p0), %v1801_v48  ;;  %v687_v2 = vmax.f32 (!%p1303_p0), %v685_v62, 0.0  ;;  %v688_v6 = vmax.f32 (!%p1303_p0), %v686_v63, 0.0  ;;  %v796_v12 = vmul.f32 (!%p1303_p0), 0.03125, %v795_v11  ;;  %v798_v14 = vmul.f32 (!%p1303_p0), 0.03125, %v797_v13  ;;  %v802_v20 = vld [vmem:[%s482_s4] sm:$0x1] (!%p1303_p0) }
 0x1bb   : > { %1416 = vmatpush3.bf16.msra.mxu1 %v1585_v53  ;;  %v806_v25 = vld [vmem:[%s485_s5] sm:$0x1]  ;;  %v1594_v43 = vld [vmem:[#allocation9 + $0x10] sm:$0xff]   ;;  %v1595_v44 = vld [vmem:[#allocation9 + $0x18] sm:$0xff]  }
 0x1bc   : > { %1417 = vmatprep.subr.bf16.mxu1 %v1801_v48  ;;  %v689_v8 = vpack.c.bf16 %v688_v6, %v687_v2  ;;  %v799_v15 = vmul.f32 %v796_v12, %v796_v12  ;;  %v1593_v42 = vld [vmem:[#allocation9 + $0x8] sm:$0xff]   ;;  %v1596_v45 = vld [vmem:[#allocation9 + $0x20] sm:$0xff]   ;;  %v1598_v47 = vld [vmem:[#allocation9 + $0x30] sm:$0xff]  }
 0x1bd   : > { %1398 = vmatpush3.bf16.msra.mxu0 %v1578_v50  ;;  %v1597_v46 = vld [vmem:[#allocation9 + $0x28] sm:$0xff]   ;;  %v1599_v49 = vld [vmem:[#allocation9 + $0x38] sm:$0xff]   ;;  %v1323_v50 = vcombine.low %v2105_v0, %v2107_v1 }
 0x1be   : > { %1399 = vmatprep.subr.bf16.mxu0 %v1801_v48  ;;  %v800_v16 = vsub.f32 %v798_v14, %v799_v15  ;;  %v1314_v51 = vld [vmem:[%s2270_s3] ss:$0 sm:$0xff] }
 0x1bf   : > { %1418 = vmatpush3.bf16.msra.mxu1 %v1586_v56 }
 0x1c0   : > { %1419 = vmatprep.subr.bf16.mxu1 %v1801_v48  ;;  %v801_v17 = vmax.f32 %v800_v16, 0.0 }
 0x1c1   : > { %1400 = vmatpush3.bf16.msra.mxu0 %v1579_v52 }
 0x1c2   : > { %1401 = vmatprep.subr.bf16.mxu0 %v1801_v48  ;;  %v803_v18 = vadd.f32 1e-05, %v801_v17 }
 0x1c3   : > { %1420 = vmatpush3.bf16.msra.mxu1 %v1587_v61 }
 0x1c4   : > { %1421 = vmatprep.subr.bf16.mxu1 %v1801_v48  ;;  %1600 = vrsqrt.f32 %v803_v18 }
 0x1c5   : > { %1402 = vmatpush3.bf16.msra.mxu0 %v1580_v54 }
 0x1c6   : > { %1403 = vmatprep.subr.bf16.mxu0 %v1801_v48 }
 0x1c7   : > { %1422 = vmatpush3.bf16.msra.mxu1 %v1588_v5 }
 0x1c8   : > { %1423 = vmatprep.subr.bf16.mxu1 %v1801_v48 }
 0x1c9   : > { %1404 = vmatpush3.bf16.msra.mxu0 %v1581_v57 }
 0x1ca   : > { %1405 = vmatprep.subr.bf16.mxu0 %v1801_v48 }
 0x1cb   : > { %1424 = vmatpush3.bf16.msra.mxu1 %v1589_v7 }
 0x1cc   : > { %1425 = vmatprep.subr.bf16.mxu1 %v1801_v48 }
 0x1cd   : > { %1406 = vmatpush3.bf16.msra.mxu0 %v1582_v4 }
 0x1ce   : > { %1407 = vmatprep.subr.bf16.mxu0 %v1801_v48  ;;  %v1601_v19 = vpop.eup %1600 }
 0x1cf   : > { %1426 = vmatpush3.bf16.msra.mxu1 %v1590_v9  ;;  %v805_v22 = vmul.f32 %v1601_v19, %v802_v20 }
 0x1d0   : > { %1427 = vmatprep.subr.bf16.mxu1 %v1801_v48 }
 0x1d1   : > { %1408 = vmatpush3.bf16.msra.mxu0 %v1583_v3  ;;  %v807_v24 = vmul.f32 %v805_v22, %v796_v12  ;;  %v813_v28 = vrot.slane %v805_v22, %v812_v26 }
 0x1d3   : > { %1428 = vmatpush3.bf16.msra.mxu1 %v1591_v10  ;;  %v808_v27 = vsub.f32 %v806_v25, %v807_v24 }
 0x1d4   : > { %1410 = vmatmul.mubr.bf16.vlgmr.msra.gmra.mrb[0].mxu0 %v689_v8  ;;  %1433 = vmatprep.subr.bf16.mxu1 %v1801_v48 }
 0x1d5   : > { %v821_v29 = vrot.slane %v808_v27, %v812_v26 }
 0x2a7   : > { %v788_v30 = vpop.f32.mrb[0].mxu0 }
 0x2a8   : > { %v815_v31 = vmul.f32 %v813_v28, %v788_v30  ;;  %v1411_v32 = vpop.f32.mrb[1].mxu0 }
 0x2a9   : > { %v791_v33 = vpop.f32.mrb[2].mxu0 }
 0x2aa   : > { %v823_v34 = vadd.f32 %v821_v29, %v815_v31  ;;  %v816_v35 = vmul.f32 %v813_v28, %v791_v33  ;;  %v1412_v36 = vpop.f32.mrb[3].mxu0 }
 0x2ac   : > { %v824_v37 = vadd.f32 %v821_v29, %v816_v35  ;;  %v825_v38 = vmax.f32 %v823_v34, 0.0 }
 0x2ae   : > { %v826_v39 = vmax.f32 %v824_v37, 0.0 }
 0x2b0   : > { %v827_v41 = vpack.c.bf16 %v826_v39, %v825_v38 }
 0x2b2   : > { %1430 = vmatmul.mubr.bf16.vlgmr.msra.gmra.mrb[0].mxu1 %v827_v41 }
 0x2b3   : > { %1434 = vmatpush3.bf16.msra.mxu1 %v1592_v40  ;;  %1449 = vmatprep.mubr.msk.bf16.mxu1 %vm1802_vm1, %v1801_v48 }
 0x2b4   : > { %1435 = vmatprep.subr.bf16.mxu1 %v1801_v48 }
 0x2b7   : > { %1436 = vmatpush3.bf16.msra.mxu1 %v1593_v42 }
 0x2b8   : > { %1437 = vmatprep.subr.bf16.mxu1 %v1801_v48 }
 0x2bb   : > { %1438 = vmatpush3.bf16.msra.mxu1 %v1594_v43 }
 0x2bc   : > { %1439 = vmatprep.subr.bf16.mxu1 %v1801_v48 }
 0x2bf   : > { %1440 = vmatpush3.bf16.msra.mxu1 %v1595_v44 }
 0x2c0   : > { %1441 = vmatprep.subr.bf16.mxu1 %v1801_v48 }
 0x2c3   : > { %1442 = vmatpush3.bf16.msra.mxu1 %v1596_v45 }
 0x2c4   : > { %1443 = vmatprep.subr.bf16.mxu1 %v1801_v48 }
 0x2c7   : > { %1444 = vmatpush3.bf16.msra.mxu1 %v1597_v46 }
 0x2c8   : > { %1445 = vmatprep.subr.bf16.mxu1 %v1801_v48 }
 0x2cb   : > { %1446 = vmatpush3.bf16.msra.mxu1 %v1598_v47 }
 0x2cc   : > { %1447 = vmatprep.subr.bf16.mxu1 %v1801_v48 }
 0x2cf   : > { %1448 = vmatpush3.bf16.msra.mxu1 %v1599_v49 }
 0x2d2   : > { %1450 = vmatmul.mubr.bf16.vlgmr.msra.gmra.mrb[0].mxu1 %v1323_v50 }
 0x3a5   : > { %v1044_v52 = vpop.f32.mrb[0].mxu1 }
 0x3a6   : > { %v1451_v53 = vpop.f32.mrb[1].mxu1  ;;  %v1453_v54 = vadd.f32 %v1314_v51, %v1044_v52 }
 0x3a7   : > { %v1047_v55 = vpop.f32.mrb[2].mxu1 }
 0x3a8   : > { %1053 = vxpose.xlu0.b32.start [1/2] (short) %v1453_v54, 128  ;;  %v1452_v48 = vpop.f32.mrb[3].mxu1  ;;  %v1454_v56 = vadd.f32 %v1314_v51, %v1047_v55 }
 0x3ac   : > { %1054 = vxpose.xlu0.b32.end [2/2] (short) %v1454_v56, 128 }
 0x428   : > { %v1069_v0 = vpop.trf.xlu0 }
 0x429   : > { %1086 = vst.msk [vmem:[%s2114_s2] sm:$0xff] %vm1085_vm2, %v1069_v0 }
 0x42c   : > { %v1070_v1 = vpop.trf.xlu0 }
 0x42d   : > { %1087 = vst.msk [vmem:[%s2114_s2 + $0x8] sm:$0xff] %vm1085_vm2, %v1070_v1 }
 0x430   : > { %v1071_v57 = vpop.trf.xlu0 }
 0x431   : > { %1088 = vst.msk [vmem:[%s2114_s2 + $0x10] sm:$0xff] %vm1085_vm2, %v1071_v57 }
 0x434   : > { %v1072_v58 = vpop.trf.xlu0 }
 0x435   : > { %1089 = vst.msk [vmem:[%s2114_s2 + $0x18] sm:$0xff] %vm1085_vm2, %v1072_v58 }
 0x438   : > { %v1073_v59 = vpop.trf.xlu0 }
 0x439   : > { %1090 = vst.msk [vmem:[%s2114_s2 + $0x20] sm:$0xff] %vm1085_vm2, %v1073_v59 }
 0x43c   : > { %v1074_v60 = vpop.trf.xlu0 }
 0x43d   : > { %1091 = vst.msk [vmem:[%s2114_s2 + $0x28] sm:$0xff] %vm1085_vm2, %v1074_v60 }
 0x440   : > { %v1075_v61 = vpop.trf.xlu0 }
 0x441   : > { %1092 = vst.msk [vmem:[%s2114_s2 + $0x30] sm:$0xff] %vm1085_vm2, %v1075_v61 }
 0x444   : > { %v1076_v62 = vpop.trf.xlu0 }
 0x445   : > { %1093 = vst.msk [vmem:[%s2114_s2 + $0x38] sm:$0xff] %vm1085_vm2, %v1076_v62 }
 0x448   : > { %v1077_v63 = vpop.trf.xlu0 }
 0x449   : > { %1094 = vst.msk [vmem:[%s2114_s2 + $0x40] sm:$0xff] %vm1085_vm2, %v1077_v63 }
 0x44c   : > { %v1078_v4 = vpop.trf.xlu0 }
 0x44d   : > { %1095 = vst.msk [vmem:[%s2114_s2 + $0x48] sm:$0xff] %vm1085_vm2, %v1078_v4 }
 0x450   : > { %v1079_v5 = vpop.trf.xlu0 }
 0x451   : > { %1096 = vst.msk [vmem:[%s2114_s2 + $0x50] sm:$0xff] %vm1085_vm2, %v1079_v5 }
 0x454   : > { %v1080_v2 = vpop.trf.xlu0 }
 0x455   : > { %1097 = vst.msk [vmem:[%s2114_s2 + $0x58] sm:$0xff] %vm1085_vm2, %v1080_v2 }
 0x458   : > { %v1081_v6 = vpop.trf.xlu0 }
 0x459   : > { %1098 = vst.msk [vmem:[%s2114_s2 + $0x60] sm:$0xff] %vm1085_vm2, %v1081_v6 }
 0x45c   : > { %v1082_v3 = vpop.trf.xlu0 }
 0x45d   : > { %1099 = vst.msk [vmem:[%s2114_s2 + $0x68] sm:$0xff] %vm1085_vm2, %v1082_v3 }
 0x460   : > { %v1083_v7 = vpop.trf.xlu0 }
 0x461   : > { %1100 = vst.msk [vmem:[%s2114_s2 + $0x70] sm:$0xff] %vm1085_vm2, %v1083_v7 }
 0x464   : > { %v1084_v8 = vpop.trf.xlu0 }
 0x465   : > { %1101 = vst.msk [vmem:[%s2114_s2 + $0x78] sm:$0xff] %vm1085_vm2, %v1084_v8 }
 0x466 PF: > { %s24_s16 = sadd.s32 1, %s1790_s16   ;;  %s2271_s30 = smov %s1766_s10 }
 0x467   : > { %p21_p2 = scmp.ge.s32.totalorder %s24_s16, 6   ;;  %s2272_s10 = smov %s1770_s11 }
 0x468   : > { %s2273_s11 = smov %s2018_s27  ;;  %s2274_s12 = smov %s1782_s14 }
 0x469   : > { %s2275_s13 = smov %s1786_s15  ;;  %s2276_s14 = smov %s2279_s7 }
 0x46a   : > { %s2277_s15 = smov %s2283_s23  ;;  %23 = sbr.rel (!%p21_p2) target bundleno = 15 (0xf), region = 132 }
 0x471   :  { %1138 = vsyncpa [#allocation5], 1 }
 0x472   :  { %1140 = vsyncpa [#allocation5 + $0x1], 1 }
 0x473   :  { %1141 = vsyncpa [#allocation7], 1 }
 0x474   :  { %1142 = vsyncpa [#allocation10], 1 }

// kernel: tpu_custom_call.1
= control target key start
LH: loop header
LB: loop body
LE: loop exit
PB: predicated region body
PF: predicated region fallthrough
CT: control target
= control target key end

     0   :  { %s2232_s0 = inlined_call_operand.hbm [shape: bf16[2,16,128], index: 0, kind: input, shape index: {}]   ;;  %s2233_s1 = inlined_call_operand.vmem [shape: f32[2,1,128], index: 1, kind: input, shape index: {}]   ;;  %s2234_s2 = inlined_call_operand.vmem [shape: f32[2,1,128], index: 2, kind: input, shape index: {}]   ;;  %s2235_s3 = inlined_call_operand.vmem [shape: f32[2,1,128], index: 3, kind: input, shape index: {}]   ;;  %s2236_s4 = inlined_call_operand.vmem [shape: f32[2,1,128], index: 4, kind: input, shape index: {}]   ;;  %s2237_s5 = inlined_call_operand.hbm [shape: bf16[128,128], index: 5, kind: input, shape index: {}]   ;;  %s2238_s6 = inlined_call_operand.hbm [shape: bf16[128,128], index: 6, kind: input, shape index: {}]   ;;  %s2239_s7 = inlined_call_operand.vmem [shape: f32[1,128], index: 7, kind: input, shape index: {}]   ;;  %s2240_s8 = inlined_call_operand.hbm [shape: bf16[128,128], index: 8, kind: input, shape index: {}]   ;;  %s2241_s9 = inlined_call_operand.vmem [shape: f32[2,128,16], index: 9, kind: output, shape index: {}]  }
   0x1   :  { %2246 = sst [smem:[#allocation14_spill]] %s2232_s0 }
   0x2   :  { %2247 = sst [smem:[#allocation15_spill]] %s2234_s2 }
   0x3   :  { %2248 = sst [smem:[#allocation16_spill]] %s2235_s3 }
   0x4   :  { %2249 = sst [smem:[#allocation17_spill]] %s2236_s4 }
   0x5   :  { %2250 = sst [smem:[#allocation18_spill]] %s2237_s5 }
   0x6   :  { %2251 = sst [smem:[#allocation19_spill]] %s2239_s7 }
   0x7   :  { %2252 = sst [smem:[#allocation20_spill]] %s2241_s9 }
   0x8   :  { %14 = vsyncpa [#allocation5], 0 }
   0x9   :  { %16 = vsyncpa [#allocation5 + $0x1], 0 }
   0xa   :  { %17 = vsyncpa [#allocation7], 0 }
   0xb   :  { %18 = vsyncpa [#allocation10], 0  ;;  %s1853_s30 = smov 0   ;;  %s1855_s10 = smov 0  }
   0xc   :  { %s1857_s11 = smov 0   ;;  %s1859_s12 = smov 0  }
   0xd   :  { %s1861_s13 = smov 0   ;;  %s1863_s14 = smov 0  }
   0xe   :  { %s1865_s15 = smov 0   ;;  %s1867_s16 = smov 0  }
   0xf LB: > { %s1274_s17 = sadd.s32 4294967295, %s1790_s16   ;;  %p65_p0 = scmp.ne.s32.totalorder %s1766_s10, %s1762_s30  ;;  %s1790_s16 = sphi %s1867_s16, %s24_s16   ;;  %s1786_s15 = sphi %s1865_s15, %s2277_s15   ;;  %s1782_s14 = sphi %s1863_s14, %s2276_s14   ;;  %s1778_s13 = sphi %s1861_s13, %s2275_s13   ;;  %s1774_s12 = sphi %s1859_s12, %s2274_s12   ;;  %s1770_s11 = sphi %s1857_s11, %s2273_s11   ;;  %s1766_s10 = sphi %s1855_s10, %s2272_s10   ;;  %s1762_s30 = sphi %s1853_s30, %s2271_s30  }
  0x10   : > { %p1893_p1 = scmp.eq.s32.totalorder %s1274_s17, 0  ;;  %p1276_p2 = scmp.ge.s32.totalorder %s1790_s16, 1 }
  0x11   : > { %p298_p3 = scmp.lt.s32.totalorder %s1790_s16, 5  ;;  %s1792_s21 = smov [#allocation6]  }
  0x12   : > { %s2253_s18 = scalar_select %p1893_p1, 1, 0 }
  0x13   : > { %p1901_p4 = por %p1893_p1, %p65_p0  ;;  %p1905_p5 = pnand %p1276_p2, %p298_p3 }
  0x14   : > { %s310_s22 = sshll.u32 %s1792_s21, 4  ;;  %s1793_s24 = smov [#allocation8]   ;;  %s1909_s22 = int_to_ptr.vmem [resolvable:$true] %s310_s22 }
  0x15   : > { %s2254_s19 = scalar_select %p1901_p4, 1, 0 }
  0x16   : > { %s2255_s20 = scalar_select %p1905_p5, 1, 0 }
  0x17   : > { %p1473_p6 = pneg %p1905_p5  ;;  %s323_s25 = sshll.u32 %s1793_s24, 4  ;;  %s1919_s25 = int_to_ptr.vmem [resolvable:$true] %s323_s25 }
  0x18   : > { %s1794_s26 = smov [#allocation9]   ;;  %s2257_s5 = sld [smem:[#allocation18_spill]] }
  0x19   : > { %p1915_p7 = pnand %p1473_p6, %p1893_p1  ;;  %s1921_s27 = sshll.u32 %s1794_s26, 4  ;;  %s340_s27 = int_to_ptr.vmem [resolvable:$true] %s1921_s27 }
  0x1b   : > { %p1931_p9 = pneg %p1915_p7 }
  0x1e   : > { %s1602_s30 = scalar_lea.hbm %s2257_s5, 1024 }
  0x1f   : > { %p1603_p8 = scmp.ne.s32.totalorder %s2257_s5, %s1602_s30  ;;  %p1609_p12 = scmp.lt.u32.totalorder %s1602_s30, %s2257_s5 }
  0x21   : > { %p1605_p10 = pnand %p1931_p9, %p1603_p8 }
  0x23   : > { %p1606_p11 = pneg %p1605_p10 }
  0x25   : > { %p1611_p13 = pnand %p1609_p12, %p1606_p11 }
  0x27   : > { %1614 = shalt.err (!%p1611_p13)
}
  0x28   : > { %s1615_s28 = scalar_lea.vmem %s1909_s22, 1024  ;;  %p1623_p6 = scmp.lt.s32.totalorder %s1909_s22, %s1909_s22 }
  0x29   : > { %p1616_p0 = scmp.ne.s32.totalorder %s1909_s22, %s1615_s28  ;;  %p1624_p1 = scmp.lt.s32.totalorder %s1615_s28, %s1615_s28 }
  0x2b   : > { %p1618_p2 = pnand %p1616_p0, %p1931_p9  ;;  %p1625_p8 = por %p1624_p1, %p1623_p6 }
  0x2d   : > { %p1619_p3 = pneg %p1618_p2 }
  0x2f   : > { %p1626_p10 = pnand %p1625_p8, %p1619_p3 }
  0x31   : > { %1629 = shalt.err (!%p1626_p10)
}
  0x32   : > { %s1795_s29 = smov 64   ;;  %s1796_s30 = smov 4  }
  0x33   : > { %1476 = dma.hbm_to_vmem [thread:$0]  (!%p1915_p7), %s2257_s5, 1024, %s1909_s22, [#allocation7], %s1795_s29, %s1795_s29, %s1796_s30  }
  0x34   : > { %s1630_s28 = scalar_lea.hbm %s2238_s6, 1024 }
  0x35   : > { %p1631_p1 = scmp.ne.s32.totalorder %s2238_s6, %s1630_s28  ;;  %p1637_p13 = scmp.lt.u32.totalorder %s1630_s28, %s2238_s6 }
  0x37   : > { %p1633_p11 = pnand %p1631_p1, %p1931_p9 }
  0x39   : > { %p1634_p12 = pneg %p1633_p11 }
  0x3b   : > { %p1639_p0 = pnand %p1637_p13, %p1634_p12 }
  0x3d   : > { %1642 = shalt.err (!%p1639_p0)
}
  0x3e   : > { %s1643_s22 = scalar_lea.vmem %s1919_s25, 1024  ;;  %p1651_p8 = scmp.lt.s32.totalorder %s1919_s25, %s1919_s25 }
  0x3f   : > { %p1644_p2 = scmp.ne.s32.totalorder %s1919_s25, %s1643_s22  ;;  %p1652_p10 = scmp.lt.s32.totalorder %s1643_s22, %s1643_s22 }
  0x41   : > { %p1646_p3 = pnand %p1644_p2, %p1931_p9  ;;  %p1653_p1 = por %p1652_p10, %p1651_p8 }
  0x43   : > { %p1647_p6 = pneg %p1646_p3 }
  0x45   : > { %p1654_p11 = pnand %p1653_p1, %p1647_p6 }
  0x47   : > { %1657 = shalt.err (!%p1654_p11)
}
  0x48   : > { %1479 = dma.hbm_to_vmem [thread:$0]  (!%p1915_p7), %s2238_s6, 1024, %s1919_s25, [#allocation7], %s1795_s29, %s1795_s29, %s1796_s30  }
  0x49   : > { %s1658_s17 = scalar_lea.hbm %s2240_s8, 1024 }
  0x4a   : > { %p1659_p12 = scmp.ne.s32.totalorder %s2240_s8, %s1658_s17  ;;  %p1665_p2 = scmp.lt.u32.totalorder %s1658_s17, %s2240_s8 }
  0x4c   : > { %p1661_p13 = pnand %p1659_p12, %p1931_p9 }
  0x4e   : > { %p1662_p0 = pneg %p1661_p13 }
  0x50   : > { %p1667_p3 = pnand %p1665_p2, %p1662_p0 }
  0x52   : > { %1670 = shalt.err (!%p1667_p3)
}
  0x53   : > { %s1671_s22 = scalar_lea.vmem %s340_s27, 1024  ;;  %p1679_p1 = scmp.lt.s32.totalorder %s340_s27, %s340_s27 }
  0x54   : > { %p1672_p6 = scmp.ne.s32.totalorder %s340_s27, %s1671_s22  ;;  %p1680_p11 = scmp.lt.s32.totalorder %s1671_s22, %s1671_s22 }
  0x56   : > { %p1674_p8 = pnand %p1672_p6, %p1931_p9  ;;  %p1681_p4 = por %p1680_p11, %p1679_p1 }
  0x58   : > { %p1675_p10 = pneg %p1674_p8 }
  0x5a   : > { %p1682_p5 = pnand %p1681_p4, %p1675_p10 }
  0x5c   : > { %1685 = shalt.err (!%p1682_p5)
}
  0x5d   : > { %1482 = dma.hbm_to_vmem [thread:$0]  (!%p1915_p7), %s2240_s8, 1024, %s340_s27, [#allocation10], %s1795_s29, %s1795_s29, %s1796_s30  }
  0x5e   : > { %s39_s7 = sadd.s32 1, %s1782_s14  ;;  %s43_s23 = sadd.s32 1, %s1786_s15 }
  0x5f   : > { %p41_p4 = scmp.ge.s32.totalorder %s39_s7, 2  ;;  %s52_s3 = sadd.s32 1, %s1770_s11 }
  0x60   : > { %p59_p5 = scmp.ne.s32.totalorder %s1770_s11, %s1766_s10  ;;  %p60_p9 = scmp.eq.s32.totalorder %s1790_s16, 0 }
  0x61   : > { %s2279_s7 = smov (%p41_p4, %s39_s7), 0  ;;  %s2281_s23 = smov (!%p41_p4, %s43_s23), %s1786_s15 }
  0x62   : > { %s47_s4 = ssub.s32 %s1782_s14, %s2279_s7  ;;  %p45_p12 = scmp.ge.s32.totalorder %s2281_s23, 2 }
  0x63   : > { %p50_p13 = scmp.eq.s32.totalorder %s47_s4, 0  ;;  %p61_p0 = por %p60_p9, %p59_p5 }
  0x64   : > { %p1490_p2 = scmp.lt.s32.totalorder %s1790_s16, 4  ;;  %s2283_s23 = smov (%p45_p12, %s2281_s23), 0 }
  0x65   : > { %s2018_s27 = scalar_select %p50_p13, %s1770_s11, %s52_s3  }
  0x66   : > { %s353_s9 = sand.u32 1, %s1770_s11   ;;  %s1334_s17 = sshll.u32 %s1782_s14, 7 }
  0x67   : > { %s1281_s21 = sshll.u32 %s353_s9, 3  ;;  %s2259_s0 = sld [smem:[#allocation14_spill]] }
  0x68   : > { %s357_s22 = scalar_lea.vmem [#allocation4], %s1281_s21  ;;  %p2027_p7 = pnand %p1490_p2, %p61_p0 }
  0x69   : > { %s366_s25 = sshll.u32 %s357_s22, 4  ;;  %s2033_s3 = scalar_lea.sflag [#allocation5], %s353_s9  ;;  %s2031_s25 = int_to_ptr.vmem [resolvable:$true] %s366_s25 }
  0x6a   : > { %p1688_p6 = pneg %p2027_p7 }
  0x6d   : > { %s2025_s28 = scalar_lea.hbm %s2259_s0, %s1334_s17  ;;  %s1691_s24 = scalar_lea.hbm %s2259_s0, 256 }
  0x6e   : > { %s1686_s4 = scalar_lea.hbm %s2025_s28, 128  ;;  %p1692_p1 = scmp.lt.u32.totalorder %s2025_s28, %s2259_s0 }
  0x6f   : > { %p1687_p3 = scmp.ne.s32.totalorder %s2025_s28, %s1686_s4  ;;  %p1693_p11 = scmp.lt.u32.totalorder %s1691_s24, %s1686_s4 }
  0x70   : > { %p1695_p5 = scmp.lt.u32.totalorder %s1686_s4, %s2025_s28 }
  0x71   : > { %p1689_p8 = pnand %p1688_p6, %p1687_p3  ;;  %p1694_p4 = por %p1693_p11, %p1692_p1 }
  0x73   : > { %p1690_p10 = pneg %p1689_p8  ;;  %p1696_p9 = por %p1695_p5, %p1694_p4 }
  0x75   : > { %p1697_p12 = pnand %p1696_p9, %p1690_p10 }
  0x77   : > { %1700 = shalt.err (!%p1697_p12)
}
  0x78   : > { %s1701_s9 = scalar_lea.vmem %s2031_s25, 128  ;;  %s1797_s17 = smov [#allocation4]  }
  0x79   : > { %p1702_p13 = scmp.ne.s32.totalorder %s2031_s25, %s1701_s9  ;;  %s1706_s21 = sshll.u32 %s1797_s17, 4  ;;  %s1707_s21 = int_to_ptr.vmem [resolvable:$false] %s1706_s21 }
  0x7a   : > { %s1708_s26 = scalar_lea.vmem %s1707_s21, 256  ;;  %p1709_p3 = scmp.lt.s32.totalorder %s2031_s25, %s1707_s21 }
  0x7b   : > { %p1704_p0 = pnand %p1702_p13, %p1688_p6  ;;  %p1710_p8 = scmp.lt.s32.totalorder %s1708_s26, %s1701_s9 }
  0x7d   : > { %p1705_p2 = pneg %p1704_p0  ;;  %p1711_p1 = por %p1710_p8, %p1709_p3 }
  0x7f   : > { %p1712_p11 = pnand %p1711_p1, %p1705_p2 }
  0x81   : > { %1715 = shalt.err (!%p1712_p11)
}
  0x82   : > { %1486 = dma.hbm_to_vmem [thread:$0]  (!%p2027_p7), %s2025_s28, 128, %s2031_s25, %s2033_s3, %s1795_s29, %s1795_s29, %s1796_s30  }
  0x83   : > { %p2261_p6 = scmp.ne.s32.totalorder %s2255_s20, 0 }
  0x84   : > { %s404_s4 = sand.u32 (!%p2261_p6), 1, %s1766_s10   ;;  %p2262_p10 = scmp.ne.s32.totalorder (!%p2261_p6), %s2254_s19, 0 }
  0x85   : > { %402 = sbr.rel (%p2261_p6) target bundleno = 1126 (0x466), region = 56  ;;  %s1285_s24 = sshll.u32 (!%p2261_p6), %s404_s4, 3 }
  0x86   : > { %s405_s22 = scalar_lea.sflag (!%p2261_p6), [#allocation5], %s404_s4  ;;  %s408_s9 = scalar_lea.vmem (!%p2261_p6), [#allocation4], %s1285_s24 }
  0x8c   : > { %1749 = dma.done.wait (%p2262_p10), %s405_s22, 128  }
  0x8d   : > { %1751 = vsyncadd (%p2262_p10), %s405_s22, 4294967168  ;;  %p2263_p4 = scmp.ne.s32.totalorder %s2253_s18, 0 }
  0x8f   : > { %1753 = dma.done.wait (%p2263_p4), [#allocation7], 2048  }
  0x90   : > { %1755 = vsyncadd (%p2263_p4), [#allocation7], 4294965248 }
  0x91   : > { %1757 = dma.done.wait (%p2263_p4), [#allocation10], 1024  }
  0x92   : > { %1759 = vsyncadd (%p2263_p4), [#allocation10], 4294966272  ;;  %p474_p7 = scmp.lt.s32.totalorder %s1774_s12, 1  ;;  %p486_p5 = scmp.eq.s32.totalorder %s1778_s13, 1  ;;  %v2105_v0 = vld [vmem:[%s408_s9] sm:$0xf] }
  0x93   : > { %s2264_s2 = sld [smem:[#allocation15_spill]]  ;;  %s2265_s26 = sld [smem:[#allocation16_spill]]  ;;  %v2107_v1 = vld [vmem:[%s408_s9 + $0x4] sm:$0xf]  ;;  %v503_v2 = vunpack.c.l.bf16 %v2105_v0 }
  0x94   : > { %s2082_s19 = scalar_select %p474_p7, %s1774_s12, 1  ;;  %v504_v3 = vunpack.c.l.bf16 %v2107_v1 }
  0x95   : > { %s487_s20 = scalar_select %p486_p5, %s1774_s12, 0 }
  0x96   : > { %s2089_s28 = scalar_lea.vmem %s2233_s1, %s2082_s19  ;;  %s2266_s0 = sld [smem:[#allocation17_spill]] }
  0x97   : > { %p489_p9 = scmp.lt.s32.totalorder %s487_s20, 1  ;;  %s2267_s25 = sld [smem:[#allocation20_spill]] }
  0x98   : > { %p1291_p12 = scmp.ne.s32.totalorder %s1778_s13, 0 }
  0x99   : > { %s2095_s3 = scalar_lea.vmem %s2264_s2, %s2082_s19  ;;  %s482_s4 = scalar_lea.vmem %s2265_s26, %s2082_s19 }
  0x9a   : > { %s2285_s20 = smov (!%p489_p9, %s487_s20), 1  ;;  %508 = sbr.rel (%p1291_p12) target bundleno = 434 (0x1b2), region = 76 }
  0x9b   : > { %s1335_s29 = sshll.u32 %s2285_s20, 7  ;;  %p509_p13 = scmp.eq.s32.totalorder (!%p1291_p12), %s1774_s12, 0 }
  0x9c   : > { %s485_s5 = scalar_lea.vmem %s2266_s0, %s2082_s19 }
  0x9d   : > { %s2114_s2 = scalar_lea.vmem %s2267_s25, %s1335_s29 }
  0xa1   : > { %514 = sbr.rel (!%p509_p13) target bundleno = 168 (0xa8), region = 80  ;;  %v1798_v4 = vmov (%p509_p13), 0.0  }
  0xa2   : > { %515 = vst [vmem:[#allocation2] sm:$0x1] (%p509_p13), %v1798_v4  ;;  %516 = vst [vmem:[#allocation3] sm:$0x1] (%p509_p13), %v1798_v4 }
  0xa8 PF: > { %v1568_v5 = vld [vmem:[#allocation6] sm:$0xff]   ;;  %v1799_v6 = vmov 0.0   ;;  %v1569_v7 = vld [vmem:[#allocation6 + $0x8] sm:$0xff]   ;;  %vm1800_vm0 = vmmov 0   ;;  %v1570_v8 = vld [vmem:[#allocation6 + $0x10] sm:$0xff]  }
  0xa9   : > { %1373 = vmatprep.subr.bf16.mxu0 %v1799_v6  ;;  %1389 = vmatprep.mubr.msk.bf16.mxu0 %vm1800_vm0, %v1799_v6  ;;  %v1571_v9 = vld [vmem:[#allocation6 + $0x18] sm:$0xff]   ;;  %v1572_v10 = vld [vmem:[#allocation6 + $0x20] sm:$0xff]   ;;  %v1293_v11 = vld [vmem:[%s2089_s28] ss:$0 sm:$0xff] }
  0xaa   : > { %1374 = vmatpush3.bf16.msra.mxu0 %v1568_v5  ;;  %v524_v12 = vmul.f32 %v1293_v11, %v503_v2  ;;  %v525_v13 = vmul.f32 %v1293_v11, %v504_v3  ;;  %v1573_v14 = vld [vmem:[#allocation6 + $0x28] sm:$0xff]   ;;  %v1574_v18 = vld [vmem:[#allocation6 + $0x30] sm:$0xff]   ;;  %v1575_v21 = vld [vmem:[#allocation6 + $0x38] sm:$0xff]  }
  0xab   : > { %1375 = vmatprep.subr.bf16.mxu0 %v1799_v6  ;;  %v1294_v15 = vld [vmem:[%s2095_s3] ss:$0 sm:$0xff]  ;;  %v653_v43 = vld [vmem:[#allocation3] sm:$0x1] }
  0xac   : > { %v533_v16 = vadd.f32 %v1294_v15, %v524_v12  ;;  %v534_v17 = vadd.f32 %v1294_v15, %v525_v13  ;;  %v643_v40 = vld [vmem:[#allocation2] sm:$0x1] }
  0xae   : > { %1376 = vmatpush3.bf16.msra.mxu0 %v1569_v7  ;;  %v535_v19 = vmax.f32 %v533_v16, 0.0  ;;  %v536_v20 = vmax.f32 %v534_v17, 0.0 }
  0xaf   : > { %1377 = vmatprep.subr.bf16.mxu0 %v1799_v6 }
  0xb0   : > { %v537_v22 = vpack.c.bf16 %v536_v20, %v535_v19 }
  0xb2   : > { %1378 = vmatpush3.bf16.msra.mxu0 %v1570_v8 }
  0xb3   : > { %1379 = vmatprep.subr.bf16.mxu0 %v1799_v6 }
  0xb6   : > { %1380 = vmatpush3.bf16.msra.mxu0 %v1571_v9 }
  0xb7   : > { %1381 = vmatprep.subr.bf16.mxu0 %v1799_v6 }
  0xba   : > { %1382 = vmatpush3.bf16.msra.mxu0 %v1572_v10 }
  0xbb   : > { %1383 = vmatprep.subr.bf16.mxu0 %v1799_v6 }
  0xbe   : > { %1384 = vmatpush3.bf16.msra.mxu0 %v1573_v14 }
  0xbf   : > { %1385 = vmatprep.subr.bf16.mxu0 %v1799_v6 }
  0xc2   : > { %1386 = vmatpush3.bf16.msra.mxu0 %v1574_v18 }
  0xc3   : > { %1387 = vmatprep.subr.bf16.mxu0 %v1799_v6 }
  0xc6   : > { %1388 = vmatpush3.bf16.msra.mxu0 %v1575_v21 }
  0xc9   : > { %1390 = vmatmul.mubr.bf16.vlgmr.msra.gmra.mrb[0].mxu0 %v537_v22 }
 0x19c   : > { %v636_v23 = vpop.f32.mrb[0].mxu0 }
 0x19d   : > { %v1391_v24 = vpop.f32.mrb[1].mxu0  ;;  %v654_v26 = vmul.f32 %v636_v23, %v636_v23 }
 0x19e   : > { %v639_v25 = vpop.f32.mrb[2].mxu0 }
 0x19f   : > { %v644_v27 = vadd.f32 %v639_v25, %v636_v23  ;;  %v655_v28 = vmul.f32 %v639_v25, %v639_v25  ;;  %v1392_v29 = vpop.f32.mrb[3].mxu0 }
 0x1a1   : > { %v645_v30 = vrot.slane %v644_v27, 4  ;;  %v656_v31 = vadd.f32 %v655_v28, %v654_v26 }
 0x1a3   : > { %v646_v32 = vadd.f32 %v645_v30, %v644_v27  ;;  %v657_v33 = vrot.slane %v656_v31, 4 }
 0x1a5   : > { %v647_v34 = vrot.slane %v646_v32, 2  ;;  %v658_v35 = vadd.f32 %v657_v33, %v656_v31 }
 0x1a7   : > { %v648_v36 = vadd.f32 %v647_v34, %v646_v32  ;;  %v659_v37 = vrot.slane %v658_v35, 2 }
 0x1a9   : > { %v649_v38 = vrot.slane %v648_v36, 1  ;;  %v660_v39 = vadd.f32 %v659_v37, %v658_v35 }
 0x1ab   : > { %v650_v41 = vadd.f32 %v649_v38, %v648_v36  ;;  %v661_v42 = vrot.slane %v660_v39, 1 }
 0x1ad   : > { %v651_v44 = vadd.f32 %v650_v41, %v643_v40  ;;  %v662_v45 = vadd.f32 %v661_v42, %v660_v39 }
 0x1af   : > { %652 = vst [vmem:[#allocation2] sm:$0x1] %v651_v44  ;;  %v663_v46 = vadd.f32 %v662_v45, %v653_v43 }
 0x1b1   : > { %664 = vst [vmem:[#allocation3] sm:$0x1] %v663_v46 }
 0x1b2 PF: > { %p1303_p0 = scmp.ne.s32.totalorder %s1778_s13, 1 }
 0x1b3   : > { %v1576_v47 = vld [vmem:[#allocation6] sm:$0xff] (!%p1303_p0)   ;;  %v1801_v48 = vmov (!%p1303_p0), 0.0   ;;  %v1577_v49 = vld [vmem:[#allocation6 + $0x8] sm:$0xff] (!%p1303_p0)   ;;  %vm1802_vm1 = vmmov (!%p1303_p0), 0   ;;  %v1578_v50 = vld [vmem:[#allocation6 + $0x10] sm:$0xff] (!%p1303_p0)   ;;  %v810_v21 = vlaneseq (!%p1303_p0)  ;;  %vm1085_vm2 = vcmask (!%p1303_p0), 130048  }
 0x1b4   : > { %668 = sbr.rel (%p1303_p0) target bundleno = 1126 (0x466), region = 84  ;;  %1393 = vmatprep.subr.bf16.mxu0 (!%p1303_p0), %v1801_v48  ;;  %1413 = vmatprep.subr.bf16.mxu1 (!%p1303_p0), %v1801_v48  ;;  %v1584_v51 = vld [vmem:[#allocation8] sm:$0xff] (!%p1303_p0)   ;;  %v1579_v52 = vld [vmem:[#allocation6 + $0x18] sm:$0xff] (!%p1303_p0)   ;;  %v1585_v53 = vld [vmem:[#allocation8 + $0x8] sm:$0xff] (!%p1303_p0)  }
 0x1b5   : > { %1394 = vmatpush3.bf16.msra.mxu0 (!%p1303_p0), %v1576_v47  ;;  %1409 = vmatprep.mubr.msk.bf16.mxu0 (!%p1303_p0), %vm1802_vm1, %v1801_v48  ;;  %v1580_v54 = vld [vmem:[#allocation6 + $0x20] sm:$0xff] (!%p1303_p0)   ;;  %v1304_v55 = vld [vmem:[%s2089_s28] ss:$0 sm:$0xff] (!%p1303_p0)  ;;  %v1586_v56 = vld [vmem:[#allocation8 + $0x10] sm:$0xff] (!%p1303_p0)   ;;  %v811_v23 = vshrl.u32 (!%p1303_p0), %v810_v21, 7 }
 0x1b6   : > { %1395 = vmatprep.subr.bf16.mxu0 (!%p1303_p0), %v1801_v48  ;;  %1429 = vmatprep.mubr.msk.bf16.mxu1 (!%p1303_p0), %vm1802_vm1, %v1801_v48  ;;  %v1581_v57 = vld [vmem:[#allocation6 + $0x28] sm:$0xff] (!%p1303_p0)   ;;  %v676_v59 = vmul.f32 (!%p1303_p0), %v1304_v55, %v503_v2  ;;  %v677_v60 = vmul.f32 (!%p1303_p0), %v1304_v55, %v504_v3  ;;  %v1587_v61 = vld [vmem:[#allocation8 + $0x18] sm:$0xff] (!%p1303_p0)   ;;  %v1582_v4 = vld [vmem:[#allocation6 + $0x30] sm:$0xff] (!%p1303_p0)  }
 0x1b7   : > { %1414 = vmatpush3.bf16.msra.mxu1 (!%p1303_p0), %v1584_v51  ;;  %v1305_v58 = vld [vmem:[%s2095_s3] ss:$0 sm:$0xff] (!%p1303_p0)  ;;  %v1588_v5 = vld [vmem:[#allocation8 + $0x20] sm:$0xff] (!%p1303_p0)   ;;  %v1583_v3 = vld [vmem:[#allocation6 + $0x38] sm:$0xff] (!%p1303_p0)   ;;  %v812_v26 = vsub.s32 (!%p1303_p0), 0, %v811_v23  ;;  %s2270_s3 = sld [smem:[#allocation19_spill]] (!%p1303_p0) }
 0x1b8   : > { %1415 = vmatprep.subr.bf16.mxu1 (!%p1303_p0), %v1801_v48  ;;  %v685_v62 = vadd.f32 (!%p1303_p0), %v1305_v58, %v676_v59  ;;  %v686_v63 = vadd.f32 (!%p1303_p0), %v1305_v58, %v677_v60  ;;  %v1589_v7 = vld [vmem:[#allocation8 + $0x28] sm:$0xff] (!%p1303_p0)   ;;  %v1590_v9 = vld [vmem:[#allocation8 + $0x30] sm:$0xff] (!%p1303_p0)   ;;  %v1591_v10 = vld [vmem:[#allocation8 + $0x38] sm:$0xff] (!%p1303_p0)  }
 0x1b9   : > { %1396 = vmatpush3.bf16.msra.mxu0 (!%p1303_p0), %v1577_v49  ;;  %v795_v11 = vld [vmem:[#allocation2] sm:$0x1] (!%p1303_p0)  ;;  %v797_v13 = vld [vmem:[#allocation3] sm:$0x1] (!%p1303_p0)  ;;  %v1592_v40 = vld [vmem:[#allocation9] sm:$0xff] (!%p1303_p0)  }
 0x1ba   : > { %1397 = vmatprep.subr.bf16.mxu0 (!%p1303_p0), %v1801_v48  ;;  %v687_v2 = vmax.f32 (!%p1303_p0), %v685_v62, 0.0  ;;  %v688_v6 = vmax.f32 (!%p1303_p0), %v686_v63, 0.0  ;;  %v796_v12 = vmul.f32 (!%p1303_p0), 0.03125, %v795_v11  ;;  %v798_v14 = vmul.f32 (!%p1303_p0), 0.03125, %v797_v13  ;;  %v802_v20 = vld [vmem:[%s482_s4] sm:$0x1] (!%p1303_p0) }
 0x1bb   : > { %1416 = vmatpush3.bf16.msra.mxu1 %v1585_v53  ;;  %v806_v25 = vld [vmem:[%s485_s5] sm:$0x1]  ;;  %v1594_v43 = vld [vmem:[#allocation9 + $0x10] sm:$0xff]   ;;  %v1595_v44 = vld [vmem:[#allocation9 + $0x18] sm:$0xff]  }
 0x1bc   : > { %1417 = vmatprep.subr.bf16.mxu1 %v1801_v48  ;;  %v689_v8 = vpack.c.bf16 %v688_v6, %v687_v2  ;;  %v799_v15 = vmul.f32 %v796_v12, %v796_v12  ;;  %v1593_v42 = vld [vmem:[#allocation9 + $0x8] sm:$0xff]   ;;  %v1596_v45 = vld [vmem:[#allocation9 + $0x20] sm:$0xff]   ;;  %v1598_v47 = vld [vmem:[#allocation9 + $0x30] sm:$0xff]  }
 0x1bd   : > { %1398 = vmatpush3.bf16.msra.mxu0 %v1578_v50  ;;  %v1597_v46 = vld [vmem:[#allocation9 + $0x28] sm:$0xff]   ;;  %v1599_v49 = vld [vmem:[#allocation9 + $0x38] sm:$0xff]   ;;  %v1323_v50 = vcombine.low %v2105_v0, %v2107_v1 }
 0x1be   : > { %1399 = vmatprep.subr.bf16.mxu0 %v1801_v48  ;;  %v800_v16 = vsub.f32 %v798_v14, %v799_v15  ;;  %v1314_v51 = vld [vmem:[%s2270_s3] ss:$0 sm:$0xff] }
 0x1bf   : > { %1418 = vmatpush3.bf16.msra.mxu1 %v1586_v56 }
 0x1c0   : > { %1419 = vmatprep.subr.bf16.mxu1 %v1801_v48  ;;  %v801_v17 = vmax.f32 %v800_v16, 0.0 }
 0x1c1   : > { %1400 = vmatpush3.bf16.msra.mxu0 %v1579_v52 }
 0x1c2   : > { %1401 = vmatprep.subr.bf16.mxu0 %v1801_v48  ;;  %v803_v18 = vadd.f32 1e-05, %v801_v17 }
 0x1c3   : > { %1420 = vmatpush3.bf16.msra.mxu1 %v1587_v61 }
 0x1c4   : > { %1421 = vmatprep.subr.bf16.mxu1 %v1801_v48  ;;  %1600 = vrsqrt.f32 %v803_v18 }
 0x1c5   : > { %1402 = vmatpush3.bf16.msra.mxu0 %v1580_v54 }
 0x1c6   : > { %1403 = vmatprep.subr.bf16.mxu0 %v1801_v48 }
 0x1c7   : > { %1422 = vmatpush3.bf16.msra.mxu1 %v1588_v5 }
 0x1c8   : > { %1423 = vmatprep.subr.bf16.mxu1 %v1801_v48 }
 0x1c9   : > { %1404 = vmatpush3.bf16.msra.mxu0 %v1581_v57 }
 0x1ca   : > { %1405 = vmatprep.subr.bf16.mxu0 %v1801_v48 }
 0x1cb   : > { %1424 = vmatpush3.bf16.msra.mxu1 %v1589_v7 }
 0x1cc   : > { %1425 = vmatprep.subr.bf16.mxu1 %v1801_v48 }
 0x1cd   : > { %1406 = vmatpush3.bf16.msra.mxu0 %v1582_v4 }
 0x1ce   : > { %1407 = vmatprep.subr.bf16.mxu0 %v1801_v48  ;;  %v1601_v19 = vpop.eup %1600 }
 0x1cf   : > { %1426 = vmatpush3.bf16.msra.mxu1 %v1590_v9  ;;  %v805_v22 = vmul.f32 %v1601_v19, %v802_v20 }
 0x1d0   : > { %1427 = vmatprep.subr.bf16.mxu1 %v1801_v48 }
 0x1d1   : > { %1408 = vmatpush3.bf16.msra.mxu0 %v1583_v3  ;;  %v807_v24 = vmul.f32 %v805_v22, %v796_v12  ;;  %v813_v28 = vrot.slane %v805_v22, %v812_v26 }
 0x1d3   : > { %1428 = vmatpush3.bf16.msra.mxu1 %v1591_v10  ;;  %v808_v27 = vsub.f32 %v806_v25, %v807_v24 }
 0x1d4   : > { %1410 = vmatmul.mubr.bf16.vlgmr.msra.gmra.mrb[0].mxu0 %v689_v8  ;;  %1433 = vmatprep.subr.bf16.mxu1 %v1801_v48 }
 0x1d5   : > { %v821_v29 = vrot.slane %v808_v27, %v812_v26 }
 0x2a7   : > { %v788_v30 = vpop.f32.mrb[0].mxu0 }
 0x2a8   : > { %v815_v31 = vmul.f32 %v813_v28, %v788_v30  ;;  %v1411_v32 = vpop.f32.mrb[1].mxu0 }
 0x2a9   : > { %v791_v33 = vpop.f32.mrb[2].mxu0 }
 0x2aa   : > { %v823_v34 = vadd.f32 %v821_v29, %v815_v31  ;;  %v816_v35 = vmul.f32 %v813_v28, %v791_v33  ;;  %v1412_v36 = vpop.f32.mrb[3].mxu0 }
 0x2ac   : > { %v824_v37 = vadd.f32 %v821_v29, %v816_v35  ;;  %v825_v38 = vmax.f32 %v823_v34, 0.0 }
 0x2ae   : > { %v826_v39 = vmax.f32 %v824_v37, 0.0 }
 0x2b0   : > { %v827_v41 = vpack.c.bf16 %v826_v39, %v825_v38 }
 0x2b2   : > { %1430 = vmatmul.mubr.bf16.vlgmr.msra.gmra.mrb[0].mxu1 %v827_v41 }
 0x2b3   : > { %1434 = vmatpush3.bf16.msra.mxu1 %v1592_v40  ;;  %1449 = vmatprep.mubr.msk.bf16.mxu1 %vm1802_vm1, %v1801_v48 }
 0x2b4   : > { %1435 = vmatprep.subr.bf16.mxu1 %v1801_v48 }
 0x2b7   : > { %1436 = vmatpush3.bf16.msra.mxu1 %v1593_v42 }
 0x2b8   : > { %1437 = vmatprep.subr.bf16.mxu1 %v1801_v48 }
 0x2bb   : > { %1438 = vmatpush3.bf16.msra.mxu1 %v1594_v43 }
 0x2bc   : > { %1439 = vmatprep.subr.bf16.mxu1 %v1801_v48 }
 0x2bf   : > { %1440 = vmatpush3.bf16.msra.mxu1 %v1595_v44 }
 0x2c0   : > { %1441 = vmatprep.subr.bf16.mxu1 %v1801_v48 }
 0x2c3   : > { %1442 = vmatpush3.bf16.msra.mxu1 %v1596_v45 }
 0x2c4   : > { %1443 = vmatprep.subr.bf16.mxu1 %v1801_v48 }
 0x2c7   : > { %1444 = vmatpush3.bf16.msra.mxu1 %v1597_v46 }
 0x2c8   : > { %1445 = vmatprep.subr.bf16.mxu1 %v1801_v48 }
 0x2cb   : > { %1446 = vmatpush3.bf16.msra.mxu1 %v1598_v47 }
 0x2cc   : > { %1447 = vmatprep.subr.bf16.mxu1 %v1801_v48 }
 0x2cf   : > { %1448 = vmatpush3.bf16.msra.mxu1 %v1599_v49 }
 0x2d2   : > { %1450 = vmatmul.mubr.bf16.vlgmr.msra.gmra.mrb[0].mxu1 %v1323_v50 }
 0x3a5   : > { %v1044_v52 = vpop.f32.mrb[0].mxu1 }
 0x3a6   : > { %v1451_v53 = vpop.f32.mrb[1].mxu1  ;;  %v1453_v54 = vadd.f32 %v1314_v51, %v1044_v52 }
 0x3a7   : > { %v1047_v55 = vpop.f32.mrb[2].mxu1 }
 0x3a8   : > { %1053 = vxpose.xlu0.b32.start [1/2] (short) %v1453_v54, 128  ;;  %v1452_v48 = vpop.f32.mrb[3].mxu1  ;;  %v1454_v56 = vadd.f32 %v1314_v51, %v1047_v55 }
 0x3ac   : > { %1054 = vxpose.xlu0.b32.end [2/2] (short) %v1454_v56, 128 }
 0x428   : > { %v1069_v0 = vpop.trf.xlu0 }
 0x429   : > { %1086 = vst.msk [vmem:[%s2114_s2] sm:$0xff] %vm1085_vm2, %v1069_v0 }
 0x42c   : > { %v1070_v1 = vpop.trf.xlu0 }
 0x42d   : > { %1087 = vst.msk [vmem:[%s2114_s2 + $0x8] sm:$0xff] %vm1085_vm2, %v1070_v1 }
 0x430   : > { %v1071_v57 = vpop.trf.xlu0 }
 0x431   : > { %1088 = vst.msk [vmem:[%s2114_s2 + $0x10] sm:$0xff] %vm1085_vm2, %v1071_v57 }
 0x434   : > { %v1072_v58 = vpop.trf.xlu0 }
 0x435   : > { %1089 = vst.msk [vmem:[%s2114_s2 + $0x18] sm:$0xff] %vm1085_vm2, %v1072_v58 }
 0x438   : > { %v1073_v59 = vpop.trf.xlu0 }
 0x439   : > { %1090 = vst.msk [vmem:[%s2114_s2 + $0x20] sm:$0xff] %vm1085_vm2, %v1073_v59 }
 0x43c   : > { %v1074_v60 = vpop.trf.xlu0 }
 0x43d   : > { %1091 = vst.msk [vmem:[%s2114_s2 + $0x28] sm:$0xff] %vm1085_vm2, %v1074_v60 }
 0x440   : > { %v1075_v61 = vpop.trf.xlu0 }
 0x441   : > { %1092 = vst.msk [vmem:[%s2114_s2 + $0x30] sm:$0xff] %vm1085_vm2, %v1075_v61 }
 0x444   : > { %v1076_v62 = vpop.trf.xlu0 }
 0x445   : > { %1093 = vst.msk [vmem:[%s2114_s2 + $0x38] sm:$0xff] %vm1085_vm2, %v1076_v62 }
 0x448   : > { %v1077_v63 = vpop.trf.xlu0 }
 0x449   : > { %1094 = vst.msk [vmem:[%s2114_s2 + $0x40] sm:$0xff] %vm1085_vm2, %v1077_v63 }
 0x44c   : > { %v1078_v4 = vpop.trf.xlu0 }
 0x44d   : > { %1095 = vst.msk [vmem:[%s2114_s2 + $0x48] sm:$0xff] %vm1085_vm2, %v1078_v4 }
 0x450   : > { %v1079_v5 = vpop.trf.xlu0 }
 0x451   : > { %1096 = vst.msk [vmem:[%s2114_s2 + $0x50] sm:$0xff] %vm1085_vm2, %v1079_v5 }
 0x454   : > { %v1080_v2 = vpop.trf.xlu0 }
 0x455   : > { %1097 = vst.msk [vmem:[%s2114_s2 + $0x58] sm:$0xff] %vm1085_vm2, %v1080_v2 }
 0x458   : > { %v1081_v6 = vpop.trf.xlu0 }
 0x459   : > { %1098 = vst.msk [vmem:[%s2114_s2 + $0x60] sm:$0xff] %vm1085_vm2, %v1081_v6 }
 0x45c   : > { %v1082_v3 = vpop.trf.xlu0 }
 0x45d   : > { %1099 = vst.msk [vmem:[%s2114_s2 + $0x68] sm:$0xff] %vm1085_vm2, %v1082_v3 }
 0x460   : > { %v1083_v7 = vpop.trf.xlu0 }
 0x461   : > { %1100 = vst.msk [vmem:[%s2114_s2 + $0x70] sm:$0xff] %vm1085_vm2, %v1083_v7 }
 0x464   : > { %v1084_v8 = vpop.trf.xlu0 }
 0x465   : > { %1101 = vst.msk [vmem:[%s2114_s2 + $0x78] sm:$0xff] %vm1085_vm2, %v1084_v8 }
 0x466 PF: > { %s24_s16 = sadd.s32 1, %s1790_s16   ;;  %s2271_s30 = smov %s1766_s10 }
 0x467   : > { %p21_p2 = scmp.ge.s32.totalorder %s24_s16, 6   ;;  %s2272_s10 = smov %s1770_s11 }
 0x468   : > { %s2273_s11 = smov %s2018_s27  ;;  %s2274_s12 = smov %s1782_s14 }
 0x469   : > { %s2275_s13 = smov %s1786_s15  ;;  %s2276_s14 = smov %s2279_s7 }
 0x46a   : > { %s2277_s15 = smov %s2283_s23  ;;  %23 = sbr.rel (!%p21_p2) target bundleno = 15 (0xf), region = 132 }
 0x471   :  { %1138 = vsyncpa [#allocation5], 1 }
 0x472   :  { %1140 = vsyncpa [#allocation5 + $0x1], 1 }
 0x473   :  { %1141 = vsyncpa [#allocation7], 1 }
 0x474   :  { %1142 = vsyncpa [#allocation10], 1 }

</bundles_post_ra>
